<compile_context>
chip_gen: v5e
topology: v5e:2x2
jax: 0.10.0
libtpu: 0.0.40
codegen_flags: <defaults>
</compile_context>

<pallas_src>
import functools

import numpy as np

import jax
import jax.numpy as jnp
from jax import lax
from jax.experimental import pallas as pl
from jax.experimental.pallas import tpu as pltpu

_BN_EPS = 1e-3
_NEG_SLOPE = 0.2
_LANE = 128
_CIN_ALIGN = 16          # bf16 sublane packing -> keep im2col row blocks aligned
_COUT_ALIGN = 8
_MATMUL_DTYPE = jnp.bfloat16
_VMEM_LIMIT_BYTES = 48 * 1024 * 1024   # explicit; fits v7x's 64 MiB physical VMEM


# --------------------------------------------------------------------------- #
# Pallas kernel: folded-BN affine -> LeakyReLU -> KHxKW conv [-> + residual].
# One grid step = one batch tile; images of the tile are stacked along lanes.
# --------------------------------------------------------------------------- #
def _affine_act_conv_kernel(*refs, CINP, COUTP, LT, W, KH, KW, neg_slope,
                            has_affine, apply_act, has_residual, use_im2col,
                            matmul_dtype):
    nt = KH * KW
    PH, PW = KH // 2, KW // 2
    PADL = PH * W + PW                       # max |lane shift| of any tap
    LPAD = ((PADL + _LANE - 1) // _LANE) * _LANE if nt > 1 else 0

    it = iter(refs)
    x_ref = next(it)                                     # (CINP, LT) f32
    scale_ref = next(it) if has_affine else None         # (CINP, 1) f32
    shift_ref = next(it) if has_affine else None         # (CINP, 1) f32
    w_ref = next(it)                                     # (COUTP, nt*CINP) bf16
    b_ref = next(it)                                     # (COUTP, 1) f32
    mask_ref = next(it) if nt > 1 else None              # (nt, LT) f32 0/1
    res_ref = next(it) if has_residual else None         # (COUTP, LT) f32
    o_ref = next(it)                                     # (COUTP, LT) f32
    ypad_ref = next(it) if nt > 1 else None              # (CINP, LPAD+LT+PADL)
    col_ref = next(it) if (nt > 1 and use_im2col) else None   # (nt*CINP, LT) bf16

    # Folded BatchNorm (eval mode) + LeakyReLU on the whole batch-stacked slab.
    # Broadcasts happen exactly once per grid step (no per-image loop).
    y = x_ref[...]
    if has_affine:
        y = y * scale_ref[...] + shift_ref[...]
    if apply_act:
        y = jnp.where(y >= 0, y, neg_slope * y)

    w_mat = w_ref[...]

    if nt == 1:
        out = jnp.dot(w_mat, y.astype(matmul_dtype),
                      preferred_element_type=jnp.float32)
    else:
        # Zero-fill only the halo columns (tiny, done every step so it is safe
        # under megacore grid sharding); mask-multiply below then never sees
        # stale VMEM (NaN * 0 == NaN otherwise).
        ypad_ref[:, 0:LPAD] = jnp.zeros((CINP, LPAD), jnp.float32)
        ypad_ref[:, LPAD + LT:LPAD + LT + PADL] = jnp.zeros((CINP, PADL),
                                                            jnp.float32)
        ypad_ref[:, LPAD:LPAD + LT] = y

        if use_im2col:
            # Small-K layers: single fused matmul with K = nt*CINP.
            t = 0
            for dh in range(KH):
                for dw in range(KW):
                    d = (dh - PH) * W + (dw - PW)
                    tap = ypad_ref[:, LPAD + d:LPAD + d + LT]
                    if d != 0:                                  # center tap: no mask
                        tap = tap * mask_ref[t:t + 1, :]        # masks are 0/1
                    col_ref[t * CINP:(t + 1) * CINP, :] = tap.astype(matmul_dtype)
                    t += 1
            out = jnp.dot(w_mat, col_ref[...], preferred_element_type=jnp.float32)
        else:
            # Large-K layers (CINP >= 128): per-tap accumulation, no 9x im2col
            # VMEM amplification and no extra vst/vld traffic.
            out = jnp.zeros((COUTP, LT), jnp.float32)
            t = 0
            for dh in range(KH):
                for dw in range(KW):
                    d = (dh - PH) * W + (dw - PW)
                    tap = ypad_ref[:, LPAD + d:LPAD + d + LT]
                    if d != 0:
                        tap = tap * mask_ref[t:t + 1, :]
                    out = out + jnp.dot(w_mat[:, t * CINP:(t + 1) * CINP],
                                        tap.astype(matmul_dtype),
                                        preferred_element_type=jnp.float32)
                    t += 1

    out = out + b_ref[...]
    if has_residual:                      # fused shortcut add (stride-1 conv only)
        out = out + res_ref[...]
    o_ref[...] = out.astype(o_ref.dtype)


# --------------------------------------------------------------------------- #
# Wrapper glue (layout plumbing only).
# --------------------------------------------------------------------------- #
def _round_up(v, m):
    return ((v + m - 1) // m) * m


def _pad_axis(a, axis, size, value=0.0):
    pad = size - a.shape[axis]
    if pad == 0:
        return a
    widths = [(0, 0)] * a.ndim
    widths[axis] = (0, pad)
    return jnp.pad(a, widths, constant_values=value)


def _tap_masks(H, W, KH, KW):
    """(KH*KW, H*W) 0/1 masks: is tap (dh, dw) in-bounds at flat position h*W+w."""
    PH, PW = KH // 2, KW // 2
    hh, ww = np.meshgrid(np.arange(H), np.arange(W), indexing="ij")
    masks = []
    for dh in range(KH):
        for dw in range(KW):
            sh, sw = hh + dh - PH, ww + dw - PW
            masks.append(((sh >= 0) & (sh < H) & (sw >= 0) & (sw < W)).reshape(-1))
    return np.stack(masks).astype(np.float32)


def bn_relu_conv(x_nchw, w_oihw, b, *, scale=None, shift=None, stride=1,
                 apply_act=True, residual=None, neg_slope=_NEG_SLOPE):
    """Fused (folded-BN affine -> LeakyReLU ->) Conv2d (+ residual add), NCHW.

    Omit scale/shift and pass apply_act=False for a plain conv (shortcut branch).
    """
    N, CIN, H, W = x_nchw.shape
    COUT, cin_w, KH, KW = w_oihw.shape
    assert cin_w == CIN
    assert residual is None or stride == 1
    nt = KH * KW
    PH, PW = KH // 2, KW // 2
    P = H * W

    CINP = _round_up(CIN, _CIN_ALIGN)
    COUTP = _round_up(COUT, _COUT_ALIGN)

    # Batch tile: stack enough images along the lane axis so every store is
    # lane-dense (>=128 lanes); keep the grid as long as possible otherwise.
    BT = min(N, -(-_LANE // P)) if P < _LANE else 1
    NB = -(-N // BT)
    NPAD = NB * BT
    LT = BT * P

    has_affine = scale is not None
    has_residual = residual is not None
    use_im2col = CINP < 128        # per-tap accumulation for large-K layers

    def to_slab(a, cpad):
        # (N, C, H, W) -> (NB, cpad, BT*P): channels on sublanes,
        # batch-tile images stacked along lanes.  For BT == 1 this is a no-op.
        a = a.astype(jnp.float32).reshape(a.shape[0], a.shape[1], P)
        a = _pad_axis(a, 1, cpad)
        a = _pad_axis(a, 0, NPAD)
        return a.reshape(NB, BT, cpad, P).transpose(0, 2, 1, 3).reshape(NB, cpad, LT)

    x_slab = to_slab(x_nchw, CINP)
    w_mat = jnp.transpose(_pad_axis(w_oihw.astype(jnp.float32), 1, CINP),
                          (0, 2, 3, 1)).reshape(COUT, nt * CINP)
    w_mat = _pad_axis(w_mat, 0, COUTP).astype(_MATMUL_DTYPE)
    b_c = _pad_axis(b.astype(jnp.float32), 0, COUTP).reshape(COUTP, 1)

    inputs = [x_slab]
    in_specs = [pl.BlockSpec((None, CINP, LT), lambda i: (i, 0, 0))]
    if has_affine:
        scale_c = _pad_axis(scale.astype(jnp.float32), 0, CINP, 1.0).reshape(CINP, 1)
        shift_c = _pad_axis(shift.astype(jnp.float32), 0, CINP).reshape(CINP, 1)
        inputs += [scale_c, shift_c]
        in_specs += [pl.BlockSpec((CINP, 1), lambda i: (0, 0)),
                     pl.BlockSpec((CINP, 1), lambda i: (0, 0))]
    inputs += [w_mat, b_c]
    in_specs += [pl.BlockSpec((COUTP, nt * CINP), lambda i: (0, 0)),
                 pl.BlockSpec((COUTP, 1), lambda i: (0, 0))]
    if nt > 1:
        masks = jnp.asarray(np.tile(_tap_masks(H, W, KH, KW), (1, BT)))
        inputs.append(masks)
        in_specs.append(pl.BlockSpec((nt, LT), lambda i: (0, 0)))
    if has_residual:
        inputs.append(to_slab(residual, COUTP))
        in_specs.append(pl.BlockSpec((None, COUTP, LT), lambda i: (i, 0, 0)))

    scratch_shapes = []
    if nt > 1:
        PADL = PH * W + PW
        LPAD = _round_up(PADL, _LANE)
        scratch_shapes.append(pltpu.VMEM((CINP, LPAD + LT + PADL), jnp.float32))
        if use_im2col:
            scratch_shapes.append(pltpu.VMEM((nt * CINP, LT), _MATMUL_DTYPE))

    kernel = functools.partial(
        _affine_act_conv_kernel,
        CINP=CINP, COUTP=COUTP, LT=LT, W=W, KH=KH, KW=KW, neg_slope=neg_slope,
        has_affine=has_affine, apply_act=apply_act, has_residual=has_residual,
        use_im2col=use_im2col, matmul_dtype=_MATMUL_DTYPE)

    out_slab = pl.pallas_call(
        kernel,
        out_shape=jax.ShapeDtypeStruct((NB, COUTP, LT), jnp.float32),
        grid_spec=pltpu.PrefetchScalarGridSpec(
            num_scalar_prefetch=0,
            grid=(NB,),
            in_specs=in_specs,
            out_specs=pl.BlockSpec((None, COUTP, LT), lambda i: (i, 0, 0)),
            scratch_shapes=scratch_shapes),
        compiler_params=pltpu.CompilerParams(
            dimension_semantics=("parallel",),
            vmem_limit_bytes=_VMEM_LIMIT_BYTES),
    )(*inputs)

    # Un-stack batch from lanes, drop channel/batch padding, then decimate the
    # full-resolution conv output with a static strided slice for stride > 1
    # (conv with pad=k//2: strided output == full-res output at [::S, ::S]).
    out = out_slab.reshape(NB, COUTP, BT, P).transpose(0, 2, 1, 3)
    out = out.reshape(NPAD, COUTP, H, W)[:N, :COUT]
    if stride > 1:
        out = out[:, :, ::stride, ::stride]
    return out


# --------------------------------------------------------------------------- #
# Module forward (_residual_block = chain of basic_block's).
# --------------------------------------------------------------------------- #
def _fold_bn(c):
    scale = c["gamma"] / jnp.sqrt(c["var"] + _BN_EPS)
    shift = c["beta"] - c["mean"] * scale
    return scale, shift


def basic_block_forward(x, p, init_subsample):
    in_f = x.shape[1]
    nb_f = p["conv1"]["w"].shape[0]

    # _shortcut: 1x1 conv when shape changes, identity otherwise.
    if in_f != nb_f or init_subsample != 1:
        sc = bn_relu_conv(x, p["shortcut"]["w"], p["shortcut"]["b"],
                          stride=init_subsample, apply_act=False)
    else:
        sc = x

    s1, t1 = _fold_bn(p["conv1"])
    x1 = bn_relu_conv(x, p["conv1"]["w"], p["conv1"]["b"], scale=s1, shift=t1,
                      stride=init_subsample, apply_act=True)
    s2, t2 = _fold_bn(p["conv2"])
    # shortcut add fused into the second (stride-1) conv kernel
    return bn_relu_conv(x1, p["conv2"]["w"], p["conv2"]["b"], scale=s2, shift=t2,
                        stride=1, apply_act=True, residual=sc)


def residual_block_forward(x, params, *, is_first_layer=False):
    reps = len(params)
    for i, p in enumerate(params):
        sub = 2 if (i == reps - 1 and not is_first_layer) else 1
        x = basic_block_forward(x, p, sub)
    return x


# --------------------------------------------------------------------------- #
# Plain-JAX reference (eval-mode BN, all f32), for correctness checking.
# --------------------------------------------------------------------------- #
def _bn_relu_conv_ref(x, c, stride):
    inv = c["gamma"] / jnp.sqrt(c["var"] + _BN_EPS)
    y = ((x - c["mean"][None, :, None, None]) * inv[None, :, None, None]
         + c["beta"][None, :, None, None])
    y = jnp.where(y >= 0, y, _NEG_SLOPE * y)
    kh, kw = c["w"].shape[2], c["w"].shape[3]
    out = lax.conv_general_dilated(
        y, c["w"], window_strides=(stride, stride),
        padding=((kh // 2, kh // 2), (kw // 2, kw // 2)),
        dimension_numbers=("NCHW", "OIHW", "NCHW"),
        precision=lax.Precision.HIGHEST)
    return out + c["b"][None, :, None, None]


def _basic_block_ref(x, p, init_subsample):
    in_f = x.shape[1]
    nb_f = p["conv1"]["w"].shape[0]
    x1 = _bn_relu_conv_ref(x, p["conv1"], init_subsample)
    x2 = _bn_relu_conv_ref(x1, p["conv2"], 1)
    if in_f != nb_f or init_subsample != 1:
        sc = lax.conv_general_dilated(
            x, p["shortcut"]["w"], (init_subsample, init_subsample),
            ((0, 0), (0, 0)), dimension_numbers=("NCHW", "OIHW", "NCHW"),
            precision=lax.Precision.HIGHEST)
        sc = sc + p["shortcut"]["b"][None, :, None, None]
    else:
        sc = x
    return sc + x2


def _residual_block_ref(x, params, *, is_first_layer=False):
    reps = len(params)
    for i, p in enumerate(params):
        sub = 2 if (i == reps - 1 and not is_first_layer) else 1
        x = _basic_block_ref(x, p, sub)
    return x


# --------------------------------------------------------------------------- #
# Deterministic example parameters + self-check.
# --------------------------------------------------------------------------- #
def _make_conv(key, cout, cin, kh, kw):
    k1, k2 = jax.random.split(key)
    return (0.1 * jax.random.normal(k1, (cout, cin, kh, kw), jnp.float32),
            0.1 * jax.random.normal(k2, (cout,), jnp.float32))


def _make_bn_conv(key, cin, cout, kh=3, kw=3):
    k1, k2, k3, k4, k5 = jax.random.split(key, 5)
    w, b = _make_conv(k1, cout, cin, kh, kw)
    return dict(
        gamma=1.0 + 0.1 * jax.random.normal(k2, (cin,), jnp.float32),
        beta=0.1 * jax.random.normal(k3, (cin,), jnp.float32),
        mean=0.1 * jax.random.normal(k4, (cin,), jnp.float32),
        var=jax.random.uniform(k5, (cin,), jnp.float32, 0.5, 1.5),
        w=w, b=b)


def _make_basic_block(key, in_f, nb_f, subsample):
    k1, k2, k3 = jax.random.split(key, 3)
    p = dict(conv1=_make_bn_conv(k1, in_f, nb_f),
             conv2=_make_bn_conv(k2, nb_f, nb_f),
             shortcut=None)
    if in_f != nb_f or subsample != 1:
        w, b = _make_conv(k3, nb_f, in_f, 1, 1)
        p["shortcut"] = dict(w=w, b=b)
    return p


if __name__ == "__main__":
    # _residual_block(in_filters=4, nb_filters=8, repetitions=2, is_first_layer=False)
    N, IN_F, NB_F, H, W = 2, 4, 16, 16, 16
    N, IN_F, NB_F, H, W = 2, 4, 8, 16, 16
    REPS, IS_FIRST = 2, False

    key = jax.random.PRNGKey(0)
    kx, *kblocks = jax.random.split(key, 1 + REPS)
    x = jax.random.normal(kx, (N, IN_F, H, W), jnp.float32)

    params = []
    for i in range(REPS):
        sub = 2 if (i == REPS - 1 and not IS_FIRST) else 1
        cin = IN_F if i == 0 else NB_F
        params.append(_make_basic_block(kblocks[i], cin, NB_F, sub))

    fwd = jax.jit(functools.partial(residual_block_forward,
                                    is_first_layer=IS_FIRST))
    out = jax.block_until_ready(fwd(x, params))
    ref = jax.block_until_ready(
        _residual_block_ref(x, params, is_first_layer=IS_FIRST))

    assert out.shape == (N, NB_F, H // 2, W // 2), out.shape
    # Matmul operands are bf16 (f32 accumulation), so tolerance is relaxed
    # versus the all-f32 reference.
    max_err = float(jnp.max(jnp.abs(out - ref)))
    assert jnp.allclose(out, ref, rtol=3e-2, atol=3e-2), max_err
    print("KERNEL_OK")
</pallas_src>

<mosaic_0001>
module attributes {stable_mosaic.version = 11 : i64} {
  func.func @_affine_act_conv_kernel(%arg0: i32, %arg1: memref<1x16x256xf32, #tpu.memory_space<vmem>>, %arg2: memref<16x1xf32, #tpu.memory_space<vmem>>, %arg3: memref<16x1xf32, #tpu.memory_space<vmem>>, %arg4: memref<8x144xbf16, #tpu.memory_space<vmem>>, %arg5: memref<8x1xf32, #tpu.memory_space<vmem>>, %arg6: memref<9x256xf32, #tpu.memory_space<vmem>>, %arg7: memref<1x8x256xf32, #tpu.memory_space<vmem>>, %arg8: memref<16x401xf32, #tpu.memory_space<vmem>>, %arg9: memref<144x256xbf16, #tpu.memory_space<vmem>>) attributes {dimension_semantics = [#tpu.dimension_semantics<parallel>], iteration_bounds = array<i64: 2>, scalar_prefetch = 0 : i64, scratch_operands = 2 : i64, tpu.core_type = #tpu.core_type<tc>, window_params = [{transform_indices = @transform_0, window_bounds = array<i64: 1, 16, 256>}, {pipeline_mode = #tpu.pipeline_mode<synchronous>, transform_indices = @transform_1, window_bounds = array<i64: 16, 1>}, {pipeline_mode = #tpu.pipeline_mode<synchronous>, transform_indices = @transform_2, window_bounds = array<i64: 16, 1>}, {pipeline_mode = #tpu.pipeline_mode<synchronous>, transform_indices = @transform_3, window_bounds = array<i64: 8, 144>}, {pipeline_mode = #tpu.pipeline_mode<synchronous>, transform_indices = @transform_4, window_bounds = array<i64: 8, 1>}, {pipeline_mode = #tpu.pipeline_mode<synchronous>, transform_indices = @transform_5, window_bounds = array<i64: 9, 256>}, {transform_indices = @transform_6, window_bounds = array<i64: 1, 8, 256>}]} {
    %c0 = arith.constant 0 : index
    %c0_0 = arith.constant 0 : index
    %c0_1 = arith.constant 0 : index
    %0 = vector.load %arg1[%c0, %c0_0, %c0_1] : memref<1x16x256xf32, #tpu.memory_space<vmem>>, vector<1x16x256xf32>
    %1 = vector.shape_cast %0 : vector<1x16x256xf32> to vector<16x256xf32>
    %c0_2 = arith.constant 0 : index
    %c0_3 = arith.constant 0 : index
    %2 = vector.load %arg2[%c0_2, %c0_3] : memref<16x1xf32, #tpu.memory_space<vmem>>, vector<16x1xf32>
    %3 = vector.broadcast %2 : vector<16x1xf32> to vector<16x256xf32>
    %4 = arith.mulf %1, %3 : vector<16x256xf32>
    %c0_4 = arith.constant 0 : index
    %c0_5 = arith.constant 0 : index
    %5 = vector.load %arg3[%c0_4, %c0_5] : memref<16x1xf32, #tpu.memory_space<vmem>>, vector<16x1xf32>
    %6 = vector.broadcast %5 : vector<16x1xf32> to vector<16x256xf32>
    %7 = arith.addf %4, %6 : vector<16x256xf32>
    %cst = arith.constant 0.000000e+00 : f32
    %8 = vector.broadcast %cst : f32 to vector<16x256xf32>
    %9 = arith.cmpf oge, %7, %8 : vector<16x256xf32>
    %cst_6 = arith.constant 2.000000e-01 : f32
    %10 = vector.broadcast %cst_6 : f32 to vector<16x256xf32>
    %11 = arith.mulf %10, %7 : vector<16x256xf32>
    %12 = arith.select %9, %7, %11 : vector<16x256xi1>, vector<16x256xf32>
    %c0_7 = arith.constant 0 : index
    %c0_8 = arith.constant 0 : index
    %13 = vector.load %arg4[%c0_7, %c0_8] : memref<8x144xbf16, #tpu.memory_space<vmem>>, vector<8x144xbf16>
    %cst_9 = arith.constant 0.000000e+00 : f32
    %14 = vector.broadcast %cst_9 : f32 to vector<16x128xf32>
    %c0_10 = arith.constant 0 : index
    %c0_11 = arith.constant 0 : index
    %15 = vector.load %arg8[%c0_10, %c0_11] : memref<16x401xf32, #tpu.memory_space<vmem>>, vector<16x128xf32>
    tpu.vector_store %arg8[%c0_10, %c0_11], %14 {strides = array<i32>} : memref<16x401xf32, #tpu.memory_space<vmem>>, vector<16x128xf32>,
    %cst_12 = arith.constant 0.000000e+00 : f32
    %16 = vector.broadcast %cst_12 : f32 to vector<16x17xf32>
    %c0_13 = arith.constant 0 : index
    %c384 = arith.constant 384 : index
    %17 = vector.load %arg8[%c0_13, %c384] : memref<16x401xf32, #tpu.memory_space<vmem>>, vector<16x17xf32>
    tpu.vector_store %arg8[%c0_13, %c384], %16 {strides = array<i32>} : memref<16x401xf32, #tpu.memory_space<vmem>>, vector<16x17xf32>,
    %c0_14 = arith.constant 0 : index
    %c128 = arith.constant 128 : index
    %18 = vector.load %arg8[%c0_14, %c128] : memref<16x401xf32, #tpu.memory_space<vmem>>, vector<16x256xf32>
    tpu.vector_store %arg8[%c0_14, %c128], %12 {strides = array<i32>} : memref<16x401xf32, #tpu.memory_space<vmem>>, vector<16x256xf32>,
    %c0_15 = arith.constant 0 : index
    %c111 = arith.constant 111 : index
    %19 = vector.load %arg8[%c0_15, %c111] : memref<16x401xf32, #tpu.memory_space<vmem>>, vector<16x256xf32>
    %c0_16 = arith.constant 0 : index
    %c0_17 = arith.constant 0 : index
    %20 = vector.load %arg6[%c0_16, %c0_17] : memref<9x256xf32, #tpu.memory_space<vmem>>, vector<1x256xf32>
    %21 = vector.broadcast %20 : vector<1x256xf32> to vector<16x256xf32>
    %22 = arith.mulf %19, %21 : vector<16x256xf32>
    %23 = arith.truncf %22 : vector<16x256xf32> to vector<16x256xbf16>
    %c0_18 = arith.constant 0 : index
    %c0_19 = arith.constant 0 : index
    %24 = vector.load %arg9[%c0_18, %c0_19] : memref<144x256xbf16, #tpu.memory_space<vmem>>, vector<16x256xbf16>
    tpu.vector_store %arg9[%c0_18, %c0_19], %23 {strides = array<i32>} : memref<144x256xbf16, #tpu.memory_space<vmem>>, vector<16x256xbf16>,
    %c0_20 = arith.constant 0 : index
    %c112 = arith.constant 112 : index
    %25 = vector.load %arg8[%c0_20, %c112] : memref<16x401xf32, #tpu.memory_space<vmem>>, vector<16x256xf32>
    %c1 = arith.constant 1 : index
    %c0_21 = arith.constant 0 : index
    %26 = vector.load %arg6[%c1, %c0_21] : memref<9x256xf32, #tpu.memory_space<vmem>>, vector<1x256xf32>
    %27 = vector.broadcast %26 : vector<1x256xf32> to vector<16x256xf32>
    %28 = arith.mulf %25, %27 : vector<16x256xf32>
    %29 = arith.truncf %28 : vector<16x256xf32> to vector<16x256xbf16>
    %c16 = arith.constant 16 : index
    %c0_22 = arith.constant 0 : index
    %30 = vector.load %arg9[%c16, %c0_22] : memref<144x256xbf16, #tpu.memory_space<vmem>>, vector<16x256xbf16>
    tpu.vector_store %arg9[%c16, %c0_22], %29 {strides = array<i32>} : memref<144x256xbf16, #tpu.memory_space<vmem>>, vector<16x256xbf16>,
    %c0_23 = arith.constant 0 : index
    %c113 = arith.constant 113 : index
    %31 = vector.load %arg8[%c0_23, %c113] : memref<16x401xf32, #tpu.memory_space<vmem>>, vector<16x256xf32>
    %c2 = arith.constant 2 : index
    %c0_24 = arith.constant 0 : index
    %32 = vector.load %arg6[%c2, %c0_24] : memref<9x256xf32, #tpu.memory_space<vmem>>, vector<1x256xf32>
    %33 = vector.broadcast %32 : vector<1x256xf32> to vector<16x256xf32>
    %34 = arith.mulf %31, %33 : vector<16x256xf32>
    %35 = arith.truncf %34 : vector<16x256xf32> to vector<16x256xbf16>
    %c32 = arith.constant 32 : index
    %c0_25 = arith.constant 0 : index
    %36 = vector.load %arg9[%c32, %c0_25] : memref<144x256xbf16, #tpu.memory_space<vmem>>, vector<16x256xbf16>
    tpu.vector_store %arg9[%c32, %c0_25], %35 {strides = array<i32>} : memref<144x256xbf16, #tpu.memory_space<vmem>>, vector<16x256xbf16>,
    %c0_26 = arith.constant 0 : index
    %c127 = arith.constant 127 : index
    %37 = vector.load %arg8[%c0_26, %c127] : memref<16x401xf32, #tpu.memory_space<vmem>>, vector<16x256xf32>
    %c3 = arith.constant 3 : index
    %c0_27 = arith.constant 0 : index
    %38 = vector.load %arg6[%c3, %c0_27] : memref<9x256xf32, #tpu.memory_space<vmem>>, vector<1x256xf32>
    %39 = vector.broadcast %38 : vector<1x256xf32> to vector<16x256xf32>
    %40 = arith.mulf %37, %39 : vector<16x256xf32>
    %41 = arith.truncf %40 : vector<16x256xf32> to vector<16x256xbf16>
    %c48 = arith.constant 48 : index
    %c0_28 = arith.constant 0 : index
    %42 = vector.load %arg9[%c48, %c0_28] : memref<144x256xbf16, #tpu.memory_space<vmem>>, vector<16x256xbf16>
    tpu.vector_store %arg9[%c48, %c0_28], %41 {strides = array<i32>} : memref<144x256xbf16, #tpu.memory_space<vmem>>, vector<16x256xbf16>,
    %c0_29 = arith.constant 0 : index
    %c128_30 = arith.constant 128 : index
    %43 = vector.load %arg8[%c0_29, %c128_30] : memref<16x401xf32, #tpu.memory_space<vmem>>, vector<16x256xf32>
    %44 = arith.truncf %43 : vector<16x256xf32> to vector<16x256xbf16>
    %c64 = arith.constant 64 : index
    %c0_31 = arith.constant 0 : index
    %45 = vector.load %arg9[%c64, %c0_31] : memref<144x256xbf16, #tpu.memory_space<vmem>>, vector<16x256xbf16>
    tpu.vector_store %arg9[%c64, %c0_31], %44 {strides = array<i32>} : memref<144x256xbf16, #tpu.memory_space<vmem>>, vector<16x256xbf16>,
    %c0_32 = arith.constant 0 : index
    %c129 = arith.constant 129 : index
    %46 = vector.load %arg8[%c0_32, %c129] : memref<16x401xf32, #tpu.memory_space<vmem>>, vector<16x256xf32>
    %c5 = arith.constant 5 : index
    %c0_33 = arith.constant 0 : index
    %47 = vector.load %arg6[%c5, %c0_33] : memref<9x256xf32, #tpu.memory_space<vmem>>, vector<1x256xf32>
    %48 = vector.broadcast %47 : vector<1x256xf32> to vector<16x256xf32>
    %49 = arith.mulf %46, %48 : vector<16x256xf32>
    %50 = arith.truncf %49 : vector<16x256xf32> to vector<16x256xbf16>
    %c80 = arith.constant 80 : index
    %c0_34 = arith.constant 0 : index
    %51 = vector.load %arg9[%c80, %c0_34] : memref<144x256xbf16, #tpu.memory_space<vmem>>, vector<16x256xbf16>
    tpu.vector_store %arg9[%c80, %c0_34], %50 {strides = array<i32>} : memref<144x256xbf16, #tpu.memory_space<vmem>>, vector<16x256xbf16>,
    %c0_35 = arith.constant 0 : index
    %c143 = arith.constant 143 : index
    %52 = vector.load %arg8[%c0_35, %c143] : memref<16x401xf32, #tpu.memory_space<vmem>>, vector<16x256xf32>
    %c6 = arith.constant 6 : index
    %c0_36 = arith.constant 0 : index
    %53 = vector.load %arg6[%c6, %c0_36] : memref<9x256xf32, #tpu.memory_space<vmem>>, vector<1x256xf32>
    %54 = vector.broadcast %53 : vector<1x256xf32> to vector<16x256xf32>
    %55 = arith.mulf %52, %54 : vector<16x256xf32>
    %56 = arith.truncf %55 : vector<16x256xf32> to vector<16x256xbf16>
    %c96 = arith.constant 96 : index
    %c0_37 = arith.constant 0 : index
    %57 = vector.load %arg9[%c96, %c0_37] : memref<144x256xbf16, #tpu.memory_space<vmem>>, vector<16x256xbf16>
    tpu.vector_store %arg9[%c96, %c0_37], %56 {strides = array<i32>} : memref<144x256xbf16, #tpu.memory_space<vmem>>, vector<16x256xbf16>,
    %c0_38 = arith.constant 0 : index
    %c144 = arith.constant 144 : index
    %58 = vector.load %arg8[%c0_38, %c144] : memref<16x401xf32, #tpu.memory_space<vmem>>, vector<16x256xf32>
    %c7 = arith.constant 7 : index
    %c0_39 = arith.constant 0 : index
    %59 = vector.load %arg6[%c7, %c0_39] : memref<9x256xf32, #tpu.memory_space<vmem>>, vector<1x256xf32>
    %60 = vector.broadcast %59 : vector<1x256xf32> to vector<16x256xf32>
    %61 = arith.mulf %58, %60 : vector<16x256xf32>
    %62 = arith.truncf %61 : vector<16x256xf32> to vector<16x256xbf16>
    %c112_40 = arith.constant 112 : index
    %c0_41 = arith.constant 0 : index
    %63 = vector.load %arg9[%c112_40, %c0_41] : memref<144x256xbf16, #tpu.memory_space<vmem>>, vector<16x256xbf16>
    tpu.vector_store %arg9[%c112_40, %c0_41], %62 {strides = array<i32>} : memref<144x256xbf16, #tpu.memory_space<vmem>>, vector<16x256xbf16>,
    %c0_42 = arith.constant 0 : index
    %c145 = arith.constant 145 : index
    %64 = vector.load %arg8[%c0_42, %c145] : memref<16x401xf32, #tpu.memory_space<vmem>>, vector<16x256xf32>
    %c8 = arith.constant 8 : index
    %c0_43 = arith.constant 0 : index
    %65 = vector.load %arg6[%c8, %c0_43] : memref<9x256xf32, #tpu.memory_space<vmem>>, vector<1x256xf32>
    %66 = vector.broadcast %65 : vector<1x256xf32> to vector<16x256xf32>
    %67 = arith.mulf %64, %66 : vector<16x256xf32>
    %68 = arith.truncf %67 : vector<16x256xf32> to vector<16x256xbf16>
    %c128_44 = arith.constant 128 : index
    %c0_45 = arith.constant 0 : index
    %69 = vector.load %arg9[%c128_44, %c0_45] : memref<144x256xbf16, #tpu.memory_space<vmem>>, vector<16x256xbf16>
    tpu.vector_store %arg9[%c128_44, %c0_45], %68 {strides = array<i32>} : memref<144x256xbf16, #tpu.memory_space<vmem>>, vector<16x256xbf16>,
    %c0_46 = arith.constant 0 : index
    %c0_47 = arith.constant 0 : index
    %70 = vector.load %arg9[%c0_46, %c0_47] : memref<144x256xbf16, #tpu.memory_space<vmem>>, vector<144x256xbf16>
    %cst_48 = arith.constant dense<0.000000e+00> : vector<8x256xf32>
    %71 = tpu.matmul %13, %70, %cst_48 {dimension_numbers = #tpu.dot_dimension_numbers<[1], [0], [0], [1], [0, 0, 1, 1], [], []>} : vector<8x144xbf16>, vector<144x256xbf16>, vector<8x256xf32> -> vector<8x256xf32>
    %c0_49 = arith.constant 0 : index
    %c0_50 = arith.constant 0 : index
    %72 = vector.load %arg5[%c0_49, %c0_50] : memref<8x1xf32, #tpu.memory_space<vmem>>, vector<8x1xf32>
    %73 = vector.broadcast %72 : vector<8x1xf32> to vector<8x256xf32>
    %74 = arith.addf %71, %73 : vector<8x256xf32>
    %c0_51 = arith.constant 0 : index
    %c0_52 = arith.constant 0 : index
    %c0_53 = arith.constant 0 : index
    %75 = vector.load %arg7[%c0_51, %c0_52, %c0_53] : memref<1x8x256xf32, #tpu.memory_space<vmem>>, vector<1x8x256xf32>
    %76 = vector.shape_cast %75 : vector<1x8x256xf32> to vector<8x256xf32>
    %77 = vector.shape_cast %74 : vector<8x256xf32> to vector<1x8x256xf32>
    tpu.vector_store %arg7[%c0_51, %c0_52, %c0_53], %77 {strides = array<i32>} : memref<1x8x256xf32, #tpu.memory_space<vmem>>, vector<1x8x256xf32>,
    return
  }
  func.func @transform_0(%arg0: i32) -> (i32, i32, i32) {
    %c0_i32 = arith.constant 0 : i32
    %c0_i32_0 = arith.constant 0 : i32
    %c0_i32_1 = arith.constant 0 : i32
    return %arg0, %c0_i32, %c0_i32_0 : i32, i32, i32
  }
  func.func @transform_1(%arg0: i32) -> (i32, i32) {
    %c0_i32 = arith.constant 0 : i32
    %c0_i32_0 = arith.constant 0 : i32
    %c0_i32_1 = arith.constant 0 : i32
    return %c0_i32, %c0_i32_0 : i32, i32
  }
  func.func @transform_2(%arg0: i32) -> (i32, i32) {
    %c0_i32 = arith.constant 0 : i32
    %c0_i32_0 = arith.constant 0 : i32
    %c0_i32_1 = arith.constant 0 : i32
    return %c0_i32, %c0_i32_0 : i32, i32
  }
  func.func @transform_3(%arg0: i32) -> (i32, i32) {
    %c0_i32 = arith.constant 0 : i32
    %c0_i32_0 = arith.constant 0 : i32
    %c0_i32_1 = arith.constant 0 : i32
    return %c0_i32, %c0_i32_0 : i32, i32
  }
  func.func @transform_4(%arg0: i32) -> (i32, i32) {
    %c0_i32 = arith.constant 0 : i32
    %c0_i32_0 = arith.constant 0 : i32
    %c0_i32_1 = arith.constant 0 : i32
    return %c0_i32, %c0_i32_0 : i32, i32
  }
  func.func @transform_5(%arg0: i32) -> (i32, i32) {
    %c0_i32 = arith.constant 0 : i32
    %c0_i32_0 = arith.constant 0 : i32
    %c0_i32_1 = arith.constant 0 : i32
    return %c0_i32, %c0_i32_0 : i32, i32
  }
  func.func @transform_6(%arg0: i32) -> (i32, i32, i32) {
    %c0_i32 = arith.constant 0 : i32
    %c0_i32_0 = arith.constant 0 : i32
    %c0_i32_1 = arith.constant 0 : i32
    return %arg0, %c0_i32, %c0_i32_0 : i32, i32, i32
  }
}

module attributes {stable_mosaic.version = 11 : i64} {
  func.func @_affine_act_conv_kernel(%arg0: i32, %arg1: memref<1x16x256xf32, #tpu.memory_space<vmem>>, %arg2: memref<8x16xbf16, #tpu.memory_space<vmem>>, %arg3: memref<8x1xf32, #tpu.memory_space<vmem>>, %arg4: memref<1x8x256xf32, #tpu.memory_space<vmem>>) attributes {dimension_semantics = [#tpu.dimension_semantics<parallel>], iteration_bounds = array<i64: 2>, scalar_prefetch = 0 : i64, scratch_operands = 0 : i64, tpu.core_type = #tpu.core_type<tc>, window_params = [{transform_indices = @transform_0, window_bounds = array<i64: 1, 16, 256>}, {pipeline_mode = #tpu.pipeline_mode<synchronous>, transform_indices = @transform_1, window_bounds = array<i64: 8, 16>}, {pipeline_mode = #tpu.pipeline_mode<synchronous>, transform_indices = @transform_2, window_bounds = array<i64: 8, 1>}, {transform_indices = @transform_3, window_bounds = array<i64: 1, 8, 256>}]} {
    %c0 = arith.constant 0 : index
    %c0_0 = arith.constant 0 : index
    %c0_1 = arith.constant 0 : index
    %0 = vector.load %arg1[%c0, %c0_0, %c0_1] : memref<1x16x256xf32, #tpu.memory_space<vmem>>, vector<1x16x256xf32>
    %1 = vector.shape_cast %0 : vector<1x16x256xf32> to vector<16x256xf32>
    %c0_2 = arith.constant 0 : index
    %c0_3 = arith.constant 0 : index
    %2 = vector.load %arg2[%c0_2, %c0_3] : memref<8x16xbf16, #tpu.memory_space<vmem>>, vector<8x16xbf16>
    %3 = arith.truncf %1 : vector<16x256xf32> to vector<16x256xbf16>
    %cst = arith.constant dense<0.000000e+00> : vector<8x256xf32>
    %4 = tpu.matmul %2, %3, %cst {dimension_numbers = #tpu.dot_dimension_numbers<[1], [0], [0], [1], [0, 0, 1, 1], [], []>} : vector<8x16xbf16>, vector<16x256xbf16>, vector<8x256xf32> -> vector<8x256xf32>
    %c0_4 = arith.constant 0 : index
    %c0_5 = arith.constant 0 : index
    %5 = vector.load %arg3[%c0_4, %c0_5] : memref<8x1xf32, #tpu.memory_space<vmem>>, vector<8x1xf32>
    %6 = vector.broadcast %5 : vector<8x1xf32> to vector<8x256xf32>
    %7 = arith.addf %4, %6 : vector<8x256xf32>
    %c0_6 = arith.constant 0 : index
    %c0_7 = arith.constant 0 : index
    %c0_8 = arith.constant 0 : index
    %8 = vector.load %arg4[%c0_6, %c0_7, %c0_8] : memref<1x8x256xf32, #tpu.memory_space<vmem>>, vector<1x8x256xf32>
    %9 = vector.shape_cast %8 : vector<1x8x256xf32> to vector<8x256xf32>
    %10 = vector.shape_cast %7 : vector<8x256xf32> to vector<1x8x256xf32>
    tpu.vector_store %arg4[%c0_6, %c0_7, %c0_8], %10 {strides = array<i32>} : memref<1x8x256xf32, #tpu.memory_space<vmem>>, vector<1x8x256xf32>,
    return
  }
  func.func @transform_0(%arg0: i32) -> (i32, i32, i32) {
    %c0_i32 = arith.constant 0 : i32
    %c0_i32_0 = arith.constant 0 : i32
    %c0_i32_1 = arith.constant 0 : i32
    return %arg0, %c0_i32, %c0_i32_0 : i32, i32, i32
  }
  func.func @transform_1(%arg0: i32) -> (i32, i32) {
    %c0_i32 = arith.constant 0 : i32
    %c0_i32_0 = arith.constant 0 : i32
    %c0_i32_1 = arith.constant 0 : i32
    return %c0_i32, %c0_i32_0 : i32, i32
  }
  func.func @transform_2(%arg0: i32) -> (i32, i32) {
    %c0_i32 = arith.constant 0 : i32
    %c0_i32_0 = arith.constant 0 : i32
    %c0_i32_1 = arith.constant 0 : i32
    return %c0_i32, %c0_i32_0 : i32, i32
  }
  func.func @transform_3(%arg0: i32) -> (i32, i32, i32) {
    %c0_i32 = arith.constant 0 : i32
    %c0_i32_0 = arith.constant 0 : i32
    %c0_i32_1 = arith.constant 0 : i32
    return %arg0, %c0_i32, %c0_i32_0 : i32, i32, i32
  }
}

module attributes {stable_mosaic.version = 11 : i64} {
  func.func @_affine_act_conv_kernel(%arg0: i32, %arg1: memref<1x16x256xf32, #tpu.memory_space<vmem>>, %arg2: memref<16x1xf32, #tpu.memory_space<vmem>>, %arg3: memref<16x1xf32, #tpu.memory_space<vmem>>, %arg4: memref<8x144xbf16, #tpu.memory_space<vmem>>, %arg5: memref<8x1xf32, #tpu.memory_space<vmem>>, %arg6: memref<9x256xf32, #tpu.memory_space<vmem>>, %arg7: memref<1x8x256xf32, #tpu.memory_space<vmem>>, %arg8: memref<1x8x256xf32, #tpu.memory_space<vmem>>, %arg9: memref<16x401xf32, #tpu.memory_space<vmem>>, %arg10: memref<144x256xbf16, #tpu.memory_space<vmem>>) attributes {dimension_semantics = [#tpu.dimension_semantics<parallel>], iteration_bounds = array<i64: 2>, scalar_prefetch = 0 : i64, scratch_operands = 2 : i64, tpu.core_type = #tpu.core_type<tc>, window_params = [{transform_indices = @transform_0, window_bounds = array<i64: 1, 16, 256>}, {pipeline_mode = #tpu.pipeline_mode<synchronous>, transform_indices = @transform_1, window_bounds = array<i64: 16, 1>}, {pipeline_mode = #tpu.pipeline_mode<synchronous>, transform_indices = @transform_2, window_bounds = array<i64: 16, 1>}, {pipeline_mode = #tpu.pipeline_mode<synchronous>, transform_indices = @transform_3, window_bounds = array<i64: 8, 144>}, {pipeline_mode = #tpu.pipeline_mode<synchronous>, transform_indices = @transform_4, window_bounds = array<i64: 8, 1>}, {pipeline_mode = #tpu.pipeline_mode<synchronous>, transform_indices = @transform_5, window_bounds = array<i64: 9, 256>}, {transform_indices = @transform_6, window_bounds = array<i64: 1, 8, 256>}, {transform_indices = @transform_7, window_bounds = array<i64: 1, 8, 256>}]} {
    %c0 = arith.constant 0 : index
    %c0_0 = arith.constant 0 : index
    %c0_1 = arith.constant 0 : index
    %0 = vector.load %arg1[%c0, %c0_0, %c0_1] : memref<1x16x256xf32, #tpu.memory_space<vmem>>, vector<1x16x256xf32>
    %1 = vector.shape_cast %0 : vector<1x16x256xf32> to vector<16x256xf32>
    %c0_2 = arith.constant 0 : index
    %c0_3 = arith.constant 0 : index
    %2 = vector.load %arg2[%c0_2, %c0_3] : memref<16x1xf32, #tpu.memory_space<vmem>>, vector<16x1xf32>
    %3 = vector.broadcast %2 : vector<16x1xf32> to vector<16x256xf32>
    %4 = arith.mulf %1, %3 : vector<16x256xf32>
    %c0_4 = arith.constant 0 : index
    %c0_5 = arith.constant 0 : index
    %5 = vector.load %arg3[%c0_4, %c0_5] : memref<16x1xf32, #tpu.memory_space<vmem>>, vector<16x1xf32>
    %6 = vector.broadcast %5 : vector<16x1xf32> to vector<16x256xf32>
    %7 = arith.addf %4, %6 : vector<16x256xf32>
    %cst = arith.constant 0.000000e+00 : f32
    %8 = vector.broadcast %cst : f32 to vector<16x256xf32>
    %9 = arith.cmpf oge, %7, %8 : vector<16x256xf32>
    %cst_6 = arith.constant 2.000000e-01 : f32
    %10 = vector.broadcast %cst_6 : f32 to vector<16x256xf32>
    %11 = arith.mulf %10, %7 : vector<16x256xf32>
    %12 = arith.select %9, %7, %11 : vector<16x256xi1>, vector<16x256xf32>
    %c0_7 = arith.constant 0 : index
    %c0_8 = arith.constant 0 : index
    %13 = vector.load %arg4[%c0_7, %c0_8] : memref<8x144xbf16, #tpu.memory_space<vmem>>, vector<8x144xbf16>
    %cst_9 = arith.constant 0.000000e+00 : f32
    %14 = vector.broadcast %cst_9 : f32 to vector<16x128xf32>
    %c0_10 = arith.constant 0 : index
    %c0_11 = arith.constant 0 : index
    %15 = vector.load %arg9[%c0_10, %c0_11] : memref<16x401xf32, #tpu.memory_space<vmem>>, vector<16x128xf32>
    tpu.vector_store %arg9[%c0_10, %c0_11], %14 {strides = array<i32>} : memref<16x401xf32, #tpu.memory_space<vmem>>, vector<16x128xf32>,
    %cst_12 = arith.constant 0.000000e+00 : f32
    %16 = vector.broadcast %cst_12 : f32 to vector<16x17xf32>
    %c0_13 = arith.constant 0 : index
    %c384 = arith.constant 384 : index
    %17 = vector.load %arg9[%c0_13, %c384] : memref<16x401xf32, #tpu.memory_space<vmem>>, vector<16x17xf32>
    tpu.vector_store %arg9[%c0_13, %c384], %16 {strides = array<i32>} : memref<16x401xf32, #tpu.memory_space<vmem>>, vector<16x17xf32>,
    %c0_14 = arith.constant 0 : index
    %c128 = arith.constant 128 : index
    %18 = vector.load %arg9[%c0_14, %c128] : memref<16x401xf32, #tpu.memory_space<vmem>>, vector<16x256xf32>
    tpu.vector_store %arg9[%c0_14, %c128], %12 {strides = array<i32>} : memref<16x401xf32, #tpu.memory_space<vmem>>, vector<16x256xf32>,
    %c0_15 = arith.constant 0 : index
    %c111 = arith.constant 111 : index
    %19 = vector.load %arg9[%c0_15, %c111] : memref<16x401xf32, #tpu.memory_space<vmem>>, vector<16x256xf32>
    %c0_16 = arith.constant 0 : index
    %c0_17 = arith.constant 0 : index
    %20 = vector.load %arg6[%c0_16, %c0_17] : memref<9x256xf32, #tpu.memory_space<vmem>>, vector<1x256xf32>
    %21 = vector.broadcast %20 : vector<1x256xf32> to vector<16x256xf32>
    %22 = arith.mulf %19, %21 : vector<16x256xf32>
    %23 = arith.truncf %22 : vector<16x256xf32> to vector<16x256xbf16>
    %c0_18 = arith.constant 0 : index
    %c0_19 = arith.constant 0 : index
    %24 = vector.load %arg10[%c0_18, %c0_19] : memref<144x256xbf16, #tpu.memory_space<vmem>>, vector<16x256xbf16>
    tpu.vector_store %arg10[%c0_18, %c0_19], %23 {strides = array<i32>} : memref<144x256xbf16, #tpu.memory_space<vmem>>, vector<16x256xbf16>,
    %c0_20 = arith.constant 0 : index
    %c112 = arith.constant 112 : index
    %25 = vector.load %arg9[%c0_20, %c112] : memref<16x401xf32, #tpu.memory_space<vmem>>, vector<16x256xf32>
    %c1 = arith.constant 1 : index
    %c0_21 = arith.constant 0 : index
    %26 = vector.load %arg6[%c1, %c0_21] : memref<9x256xf32, #tpu.memory_space<vmem>>, vector<1x256xf32>
    %27 = vector.broadcast %26 : vector<1x256xf32> to vector<16x256xf32>
    %28 = arith.mulf %25, %27 : vector<16x256xf32>
    %29 = arith.truncf %28 : vector<16x256xf32> to vector<16x256xbf16>
    %c16 = arith.constant 16 : index
    %c0_22 = arith.constant 0 : index
    %30 = vector.load %arg10[%c16, %c0_22] : memref<144x256xbf16, #tpu.memory_space<vmem>>, vector<16x256xbf16>
    tpu.vector_store %arg10[%c16, %c0_22], %29 {strides = array<i32>} : memref<144x256xbf16, #tpu.memory_space<vmem>>, vector<16x256xbf16>,
    %c0_23 = arith.constant 0 : index
    %c113 = arith.constant 113 : index
    %31 = vector.load %arg9[%c0_23, %c113] : memref<16x401xf32, #tpu.memory_space<vmem>>, vector<16x256xf32>
    %c2 = arith.constant 2 : index
    %c0_24 = arith.constant 0 : index
    %32 = vector.load %arg6[%c2, %c0_24] : memref<9x256xf32, #tpu.memory_space<vmem>>, vector<1x256xf32>
    %33 = vector.broadcast %32 : vector<1x256xf32> to vector<16x256xf32>
    %34 = arith.mulf %31, %33 : vector<16x256xf32>
    %35 = arith.truncf %34 : vector<16x256xf32> to vector<16x256xbf16>
    %c32 = arith.constant 32 : index
    %c0_25 = arith.constant 0 : index
    %36 = vector.load %arg10[%c32, %c0_25] : memref<144x256xbf16, #tpu.memory_space<vmem>>, vector<16x256xbf16>
    tpu.vector_store %arg10[%c32, %c0_25], %35 {strides = array<i32>} : memref<144x256xbf16, #tpu.memory_space<vmem>>, vector<16x256xbf16>,
    %c0_26 = arith.constant 0 : index
    %c127 = arith.constant 127 : index
    %37 = vector.load %arg9[%c0_26, %c127] : memref<16x401xf32, #tpu.memory_space<vmem>>, vector<16x256xf32>
    %c3 = arith.constant 3 : index
    %c0_27 = arith.constant 0 : index
    %38 = vector.load %arg6[%c3, %c0_27] : memref<9x256xf32, #tpu.memory_space<vmem>>, vector<1x256xf32>
    %39 = vector.broadcast %38 : vector<1x256xf32> to vector<16x256xf32>
    %40 = arith.mulf %37, %39 : vector<16x256xf32>
    %41 = arith.truncf %40 : vector<16x256xf32> to vector<16x256xbf16>
    %c48 = arith.constant 48 : index
    %c0_28 = arith.constant 0 : index
    %42 = vector.load %arg10[%c48, %c0_28] : memref<144x256xbf16, #tpu.memory_space<vmem>>, vector<16x256xbf16>
    tpu.vector_store %arg10[%c48, %c0_28], %41 {strides = array<i32>} : memref<144x256xbf16, #tpu.memory_space<vmem>>, vector<16x256xbf16>,
    %c0_29 = arith.constant 0 : index
    %c128_30 = arith.constant 128 : index
    %43 = vector.load %arg9[%c0_29, %c128_30] : memref<16x401xf32, #tpu.memory_space<vmem>>, vector<16x256xf32>
    %44 = arith.truncf %43 : vector<16x256xf32> to vector<16x256xbf16>
    %c64 = arith.constant 64 : index
    %c0_31 = arith.constant 0 : index
    %45 = vector.load %arg10[%c64, %c0_31] : memref<144x256xbf16, #tpu.memory_space<vmem>>, vector<16x256xbf16>
    tpu.vector_store %arg10[%c64, %c0_31], %44 {strides = array<i32>} : memref<144x256xbf16, #tpu.memory_space<vmem>>, vector<16x256xbf16>,
    %c0_32 = arith.constant 0 : index
    %c129 = arith.constant 129 : index
    %46 = vector.load %arg9[%c0_32, %c129] : memref<16x401xf32, #tpu.memory_space<vmem>>, vector<16x256xf32>
    %c5 = arith.constant 5 : index
    %c0_33 = arith.constant 0 : index
    %47 = vector.load %arg6[%c5, %c0_33] : memref<9x256xf32, #tpu.memory_space<vmem>>, vector<1x256xf32>
    %48 = vector.broadcast %47 : vector<1x256xf32> to vector<16x256xf32>
    %49 = arith.mulf %46, %48 : vector<16x256xf32>
    %50 = arith.truncf %49 : vector<16x256xf32> to vector<16x256xbf16>
    %c80 = arith.constant 80 : index
    %c0_34 = arith.constant 0 : index
    %51 = vector.load %arg10[%c80, %c0_34] : memref<144x256xbf16, #tpu.memory_space<vmem>>, vector<16x256xbf16>
    tpu.vector_store %arg10[%c80, %c0_34], %50 {strides = array<i32>} : memref<144x256xbf16, #tpu.memory_space<vmem>>, vector<16x256xbf16>,
    %c0_35 = arith.constant 0 : index
    %c143 = arith.constant 143 : index
    %52 = vector.load %arg9[%c0_35, %c143] : memref<16x401xf32, #tpu.memory_space<vmem>>, vector<16x256xf32>
    %c6 = arith.constant 6 : index
    %c0_36 = arith.constant 0 : index
    %53 = vector.load %arg6[%c6, %c0_36] : memref<9x256xf32, #tpu.memory_space<vmem>>, vector<1x256xf32>
    %54 = vector.broadcast %53 : vector<1x256xf32> to vector<16x256xf32>
    %55 = arith.mulf %52, %54 : vector<16x256xf32>
    %56 = arith.truncf %55 : vector<16x256xf32> to vector<16x256xbf16>
    %c96 = arith.constant 96 : index
    %c0_37 = arith.constant 0 : index
    %57 = vector.load %arg10[%c96, %c0_37] : memref<144x256xbf16, #tpu.memory_space<vmem>>, vector<16x256xbf16>
    tpu.vector_store %arg10[%c96, %c0_37], %56 {strides = array<i32>} : memref<144x256xbf16, #tpu.memory_space<vmem>>, vector<16x256xbf16>,
    %c0_38 = arith.constant 0 : index
    %c144 = arith.constant 144 : index
    %58 = vector.load %arg9[%c0_38, %c144] : memref<16x401xf32, #tpu.memory_space<vmem>>, vector<16x256xf32>
    %c7 = arith.constant 7 : index
    %c0_39 = arith.constant 0 : index
    %59 = vector.load %arg6[%c7, %c0_39] : memref<9x256xf32, #tpu.memory_space<vmem>>, vector<1x256xf32>
    %60 = vector.broadcast %59 : vector<1x256xf32> to vector<16x256xf32>
    %61 = arith.mulf %58, %60 : vector<16x256xf32>
    %62 = arith.truncf %61 : vector<16x256xf32> to vector<16x256xbf16>
    %c112_40 = arith.constant 112 : index
    %c0_41 = arith.constant 0 : index
    %63 = vector.load %arg10[%c112_40, %c0_41] : memref<144x256xbf16, #tpu.memory_space<vmem>>, vector<16x256xbf16>
    tpu.vector_store %arg10[%c112_40, %c0_41], %62 {strides = array<i32>} : memref<144x256xbf16, #tpu.memory_space<vmem>>, vector<16x256xbf16>,
    %c0_42 = arith.constant 0 : index
    %c145 = arith.constant 145 : index
    %64 = vector.load %arg9[%c0_42, %c145] : memref<16x401xf32, #tpu.memory_space<vmem>>, vector<16x256xf32>
    %c8 = arith.constant 8 : index
    %c0_43 = arith.constant 0 : index
    %65 = vector.load %arg6[%c8, %c0_43] : memref<9x256xf32, #tpu.memory_space<vmem>>, vector<1x256xf32>
    %66 = vector.broadcast %65 : vector<1x256xf32> to vector<16x256xf32>
    %67 = arith.mulf %64, %66 : vector<16x256xf32>
    %68 = arith.truncf %67 : vector<16x256xf32> to vector<16x256xbf16>
    %c128_44 = arith.constant 128 : index
    %c0_45 = arith.constant 0 : index
    %69 = vector.load %arg10[%c128_44, %c0_45] : memref<144x256xbf16, #tpu.memory_space<vmem>>, vector<16x256xbf16>
    tpu.vector_store %arg10[%c128_44, %c0_45], %68 {strides = array<i32>} : memref<144x256xbf16, #tpu.memory_space<vmem>>, vector<16x256xbf16>,
    %c0_46 = arith.constant 0 : index
    %c0_47 = arith.constant 0 : index
    %70 = vector.load %arg10[%c0_46, %c0_47] : memref<144x256xbf16, #tpu.memory_space<vmem>>, vector<144x256xbf16>
    %cst_48 = arith.constant dense<0.000000e+00> : vector<8x256xf32>
    %71 = tpu.matmul %13, %70, %cst_48 {dimension_numbers = #tpu.dot_dimension_numbers<[1], [0], [0], [1], [0, 0, 1, 1], [], []>} : vector<8x144xbf16>, vector<144x256xbf16>, vector<8x256xf32> -> vector<8x256xf32>
    %c0_49 = arith.constant 0 : index
    %c0_50 = arith.constant 0 : index
    %72 = vector.load %arg5[%c0_49, %c0_50] : memref<8x1xf32, #tpu.memory_space<vmem>>, vector<8x1xf32>
    %73 = vector.broadcast %72 : vector<8x1xf32> to vector<8x256xf32>
    %74 = arith.addf %71, %73 : vector<8x256xf32>
    %c0_51 = arith.constant 0 : index
    %c0_52 = arith.constant 0 : index
    %c0_53 = arith.constant 0 : index
    %75 = vector.load %arg7[%c0_51, %c0_52, %c0_53] : memref<1x8x256xf32, #tpu.memory_space<vmem>>, vector<1x8x256xf32>
    %76 = vector.shape_cast %75 : vector<1x8x256xf32> to vector<8x256xf32>
    %77 = arith.addf %74, %76 : vector<8x256xf32>
    %c0_54 = arith.constant 0 : index
    %c0_55 = arith.constant 0 : index
    %c0_56 = arith.constant 0 : index
    %78 = vector.load %arg8[%c0_54, %c0_55, %c0_56] : memref<1x8x256xf32, #tpu.memory_space<vmem>>, vector<1x8x256xf32>
    %79 = vector.shape_cast %78 : vector<1x8x256xf32> to vector<8x256xf32>
    %80 = vector.shape_cast %77 : vector<8x256xf32> to vector<1x8x256xf32>
    tpu.vector_store %arg8[%c0_54, %c0_55, %c0_56], %80 {strides = array<i32>} : memref<1x8x256xf32, #tpu.memory_space<vmem>>, vector<1x8x256xf32>,
    return
  }
  func.func @transform_0(%arg0: i32) -> (i32, i32, i32) {
    %c0_i32 = arith.constant 0 : i32
    %c0_i32_0 = arith.constant 0 : i32
    %c0_i32_1 = arith.constant 0 : i32
    return %arg0, %c0_i32, %c0_i32_0 : i32, i32, i32
  }
  func.func @transform_1(%arg0: i32) -> (i32, i32) {
    %c0_i32 = arith.constant 0 : i32
    %c0_i32_0 = arith.constant 0 : i32
    %c0_i32_1 = arith.constant 0 : i32
    return %c0_i32, %c0_i32_0 : i32, i32
  }
  func.func @transform_2(%arg0: i32) -> (i32, i32) {
    %c0_i32 = arith.constant 0 : i32
    %c0_i32_0 = arith.constant 0 : i32
    %c0_i32_1 = arith.constant 0 : i32
    return %c0_i32, %c0_i32_0 : i32, i32
  }
  func.func @transform_3(%arg0: i32) -> (i32, i32) {
    %c0_i32 = arith.constant 0 : i32
    %c0_i32_0 = arith.constant 0 : i32
    %c0_i32_1 = arith.constant 0 : i32
    return %c0_i32, %c0_i32_0 : i32, i32
  }
  func.func @transform_4(%arg0: i32) -> (i32, i32) {
    %c0_i32 = arith.constant 0 : i32
    %c0_i32_0 = arith.constant 0 : i32
    %c0_i32_1 = arith.constant 0 : i32
    return %c0_i32, %c0_i32_0 : i32, i32
  }
  func.func @transform_5(%arg0: i32) -> (i32, i32) {
    %c0_i32 = arith.constant 0 : i32
    %c0_i32_0 = arith.constant 0 : i32
    %c0_i32_1 = arith.constant 0 : i32
    return %c0_i32, %c0_i32_0 : i32, i32
  }
  func.func @transform_6(%arg0: i32) -> (i32, i32, i32) {
    %c0_i32 = arith.constant 0 : i32
    %c0_i32_0 = arith.constant 0 : i32
    %c0_i32_1 = arith.constant 0 : i32
    return %arg0, %c0_i32, %c0_i32_0 : i32, i32, i32
  }
  func.func @transform_7(%arg0: i32) -> (i32, i32, i32) {
    %c0_i32 = arith.constant 0 : i32
    %c0_i32_0 = arith.constant 0 : i32
    %c0_i32_1 = arith.constant 0 : i32
    return %arg0, %c0_i32, %c0_i32_0 : i32, i32, i32
  }
}

module attributes {stable_mosaic.version = 11 : i64} {
  func.func @_affine_act_conv_kernel(%arg0: i32, %arg1: memref<1x16x128xf32, #tpu.memory_space<vmem>>, %arg2: memref<16x1xf32, #tpu.memory_space<vmem>>, %arg3: memref<16x1xf32, #tpu.memory_space<vmem>>, %arg4: memref<8x144xbf16, #tpu.memory_space<vmem>>, %arg5: memref<8x1xf32, #tpu.memory_space<vmem>>, %arg6: memref<9x128xf32, #tpu.memory_space<vmem>>, %arg7: memref<1x8x128xf32, #tpu.memory_space<vmem>>, %arg8: memref<1x8x128xf32, #tpu.memory_space<vmem>>, %arg9: memref<16x265xf32, #tpu.memory_space<vmem>>, %arg10: memref<144x128xbf16, #tpu.memory_space<vmem>>) attributes {dimension_semantics = [#tpu.dimension_semantics<parallel>], iteration_bounds = array<i64: 1>, scalar_prefetch = 0 : i64, scratch_operands = 2 : i64, tpu.core_type = #tpu.core_type<tc>, window_params = [{transform_indices = @transform_0, window_bounds = array<i64: 1, 16, 128>}, {pipeline_mode = #tpu.pipeline_mode<synchronous>, transform_indices = @transform_1, window_bounds = array<i64: 16, 1>}, {pipeline_mode = #tpu.pipeline_mode<synchronous>, transform_indices = @transform_2, window_bounds = array<i64: 16, 1>}, {pipeline_mode = #tpu.pipeline_mode<synchronous>, transform_indices = @transform_3, window_bounds = array<i64: 8, 144>}, {pipeline_mode = #tpu.pipeline_mode<synchronous>, transform_indices = @transform_4, window_bounds = array<i64: 8, 1>}, {pipeline_mode = #tpu.pipeline_mode<synchronous>, transform_indices = @transform_5, window_bounds = array<i64: 9, 128>}, {transform_indices = @transform_6, window_bounds = array<i64: 1, 8, 128>}, {transform_indices = @transform_7, window_bounds = array<i64: 1, 8, 128>}]} {
    %c0 = arith.constant 0 : index
    %c0_0 = arith.constant 0 : index
    %c0_1 = arith.constant 0 : index
    %0 = vector.load %arg1[%c0, %c0_0, %c0_1] : memref<1x16x128xf32, #tpu.memory_space<vmem>>, vector<1x16x128xf32>
    %1 = vector.shape_cast %0 : vector<1x16x128xf32> to vector<16x128xf32>
    %c0_2 = arith.constant 0 : index
    %c0_3 = arith.constant 0 : index
    %2 = vector.load %arg2[%c0_2, %c0_3] : memref<16x1xf32, #tpu.memory_space<vmem>>, vector<16x1xf32>
    %3 = vector.broadcast %2 : vector<16x1xf32> to vector<16x128xf32>
    %4 = arith.mulf %1, %3 : vector<16x128xf32>
    %c0_4 = arith.constant 0 : index
    %c0_5 = arith.constant 0 : index
    %5 = vector.load %arg3[%c0_4, %c0_5] : memref<16x1xf32, #tpu.memory_space<vmem>>, vector<16x1xf32>
    %6 = vector.broadcast %5 : vector<16x1xf32> to vector<16x128xf32>
    %7 = arith.addf %4, %6 : vector<16x128xf32>
    %cst = arith.constant 0.000000e+00 : f32
    %8 = vector.broadcast %cst : f32 to vector<16x128xf32>
    %9 = arith.cmpf oge, %7, %8 : vector<16x128xf32>
    %cst_6 = arith.constant 2.000000e-01 : f32
    %10 = vector.broadcast %cst_6 : f32 to vector<16x128xf32>
    %11 = arith.mulf %10, %7 : vector<16x128xf32>
    %12 = arith.select %9, %7, %11 : vector<16x128xi1>, vector<16x128xf32>
    %c0_7 = arith.constant 0 : index
    %c0_8 = arith.constant 0 : index
    %13 = vector.load %arg4[%c0_7, %c0_8] : memref<8x144xbf16, #tpu.memory_space<vmem>>, vector<8x144xbf16>
    %cst_9 = arith.constant 0.000000e+00 : f32
    %14 = vector.broadcast %cst_9 : f32 to vector<16x128xf32>
    %c0_10 = arith.constant 0 : index
    %c0_11 = arith.constant 0 : index
    %15 = vector.load %arg9[%c0_10, %c0_11] : memref<16x265xf32, #tpu.memory_space<vmem>>, vector<16x128xf32>
    tpu.vector_store %arg9[%c0_10, %c0_11], %14 {strides = array<i32>} : memref<16x265xf32, #tpu.memory_space<vmem>>, vector<16x128xf32>,
    %cst_12 = arith.constant 0.000000e+00 : f32
    %16 = vector.broadcast %cst_12 : f32 to vector<16x9xf32>
    %c0_13 = arith.constant 0 : index
    %c256 = arith.constant 256 : index
    %17 = vector.load %arg9[%c0_13, %c256] : memref<16x265xf32, #tpu.memory_space<vmem>>, vector<16x9xf32>
    tpu.vector_store %arg9[%c0_13, %c256], %16 {strides = array<i32>} : memref<16x265xf32, #tpu.memory_space<vmem>>, vector<16x9xf32>,
    %c0_14 = arith.constant 0 : index
    %c128 = arith.constant 128 : index
    %18 = vector.load %arg9[%c0_14, %c128] : memref<16x265xf32, #tpu.memory_space<vmem>>, vector<16x128xf32>
    tpu.vector_store %arg9[%c0_14, %c128], %12 {strides = array<i32>} : memref<16x265xf32, #tpu.memory_space<vmem>>, vector<16x128xf32>,
    %c0_15 = arith.constant 0 : index
    %c119 = arith.constant 119 : index
    %19 = vector.load %arg9[%c0_15, %c119] : memref<16x265xf32, #tpu.memory_space<vmem>>, vector<16x128xf32>
    %c0_16 = arith.constant 0 : index
    %c0_17 = arith.constant 0 : index
    %20 = vector.load %arg6[%c0_16, %c0_17] : memref<9x128xf32, #tpu.memory_space<vmem>>, vector<1x128xf32>
    %21 = vector.broadcast %20 : vector<1x128xf32> to vector<16x128xf32>
    %22 = arith.mulf %19, %21 : vector<16x128xf32>
    %23 = arith.truncf %22 : vector<16x128xf32> to vector<16x128xbf16>
    %c0_18 = arith.constant 0 : index
    %c0_19 = arith.constant 0 : index
    %24 = vector.load %arg10[%c0_18, %c0_19] : memref<144x128xbf16, #tpu.memory_space<vmem>>, vector<16x128xbf16>
    tpu.vector_store %arg10[%c0_18, %c0_19], %23 {strides = array<i32>} : memref<144x128xbf16, #tpu.memory_space<vmem>>, vector<16x128xbf16>,
    %c0_20 = arith.constant 0 : index
    %c120 = arith.constant 120 : index
    %25 = vector.load %arg9[%c0_20, %c120] : memref<16x265xf32, #tpu.memory_space<vmem>>, vector<16x128xf32>
    %c1 = arith.constant 1 : index
    %c0_21 = arith.constant 0 : index
    %26 = vector.load %arg6[%c1, %c0_21] : memref<9x128xf32, #tpu.memory_space<vmem>>, vector<1x128xf32>
    %27 = vector.broadcast %26 : vector<1x128xf32> to vector<16x128xf32>
    %28 = arith.mulf %25, %27 : vector<16x128xf32>
    %29 = arith.truncf %28 : vector<16x128xf32> to vector<16x128xbf16>
    %c16 = arith.constant 16 : index
    %c0_22 = arith.constant 0 : index
    %30 = vector.load %arg10[%c16, %c0_22] : memref<144x128xbf16, #tpu.memory_space<vmem>>, vector<16x128xbf16>
    tpu.vector_store %arg10[%c16, %c0_22], %29 {strides = array<i32>} : memref<144x128xbf16, #tpu.memory_space<vmem>>, vector<16x128xbf16>,
    %c0_23 = arith.constant 0 : index
    %c121 = arith.constant 121 : index
    %31 = vector.load %arg9[%c0_23, %c121] : memref<16x265xf32, #tpu.memory_space<vmem>>, vector<16x128xf32>
    %c2 = arith.constant 2 : index
    %c0_24 = arith.constant 0 : index
    %32 = vector.load %arg6[%c2, %c0_24] : memref<9x128xf32, #tpu.memory_space<vmem>>, vector<1x128xf32>
    %33 = vector.broadcast %32 : vector<1x128xf32> to vector<16x128xf32>
    %34 = arith.mulf %31, %33 : vector<16x128xf32>
    %35 = arith.truncf %34 : vector<16x128xf32> to vector<16x128xbf16>
    %c32 = arith.constant 32 : index
    %c0_25 = arith.constant 0 : index
    %36 = vector.load %arg10[%c32, %c0_25] : memref<144x128xbf16, #tpu.memory_space<vmem>>, vector<16x128xbf16>
    tpu.vector_store %arg10[%c32, %c0_25], %35 {strides = array<i32>} : memref<144x128xbf16, #tpu.memory_space<vmem>>, vector<16x128xbf16>,
    %c0_26 = arith.constant 0 : index
    %c127 = arith.constant 127 : index
    %37 = vector.load %arg9[%c0_26, %c127] : memref<16x265xf32, #tpu.memory_space<vmem>>, vector<16x128xf32>
    %c3 = arith.constant 3 : index
    %c0_27 = arith.constant 0 : index
    %38 = vector.load %arg6[%c3, %c0_27] : memref<9x128xf32, #tpu.memory_space<vmem>>, vector<1x128xf32>
    %39 = vector.broadcast %38 : vector<1x128xf32> to vector<16x128xf32>
    %40 = arith.mulf %37, %39 : vector<16x128xf32>
    %41 = arith.truncf %40 : vector<16x128xf32> to vector<16x128xbf16>
    %c48 = arith.constant 48 : index
    %c0_28 = arith.constant 0 : index
    %42 = vector.load %arg10[%c48, %c0_28] : memref<144x128xbf16, #tpu.memory_space<vmem>>, vector<16x128xbf16>
    tpu.vector_store %arg10[%c48, %c0_28], %41 {strides = array<i32>} : memref<144x128xbf16, #tpu.memory_space<vmem>>, vector<16x128xbf16>,
    %c0_29 = arith.constant 0 : index
    %c128_30 = arith.constant 128 : index
    %43 = vector.load %arg9[%c0_29, %c128_30] : memref<16x265xf32, #tpu.memory_space<vmem>>, vector<16x128xf32>
    %44 = arith.truncf %43 : vector<16x128xf32> to vector<16x128xbf16>
    %c64 = arith.constant 64 : index
    %c0_31 = arith.constant 0 : index
    %45 = vector.load %arg10[%c64, %c0_31] : memref<144x128xbf16, #tpu.memory_space<vmem>>, vector<16x128xbf16>
    tpu.vector_store %arg10[%c64, %c0_31], %44 {strides = array<i32>} : memref<144x128xbf16, #tpu.memory_space<vmem>>, vector<16x128xbf16>,
    %c0_32 = arith.constant 0 : index
    %c129 = arith.constant 129 : index
    %46 = vector.load %arg9[%c0_32, %c129] : memref<16x265xf32, #tpu.memory_space<vmem>>, vector<16x128xf32>
    %c5 = arith.constant 5 : index
    %c0_33 = arith.constant 0 : index
    %47 = vector.load %arg6[%c5, %c0_33] : memref<9x128xf32, #tpu.memory_space<vmem>>, vector<1x128xf32>
    %48 = vector.broadcast %47 : vector<1x128xf32> to vector<16x128xf32>
    %49 = arith.mulf %46, %48 : vector<16x128xf32>
    %50 = arith.truncf %49 : vector<16x128xf32> to vector<16x128xbf16>
    %c80 = arith.constant 80 : index
    %c0_34 = arith.constant 0 : index
    %51 = vector.load %arg10[%c80, %c0_34] : memref<144x128xbf16, #tpu.memory_space<vmem>>, vector<16x128xbf16>
    tpu.vector_store %arg10[%c80, %c0_34], %50 {strides = array<i32>} : memref<144x128xbf16, #tpu.memory_space<vmem>>, vector<16x128xbf16>,
    %c0_35 = arith.constant 0 : index
    %c135 = arith.constant 135 : index
    %52 = vector.load %arg9[%c0_35, %c135] : memref<16x265xf32, #tpu.memory_space<vmem>>, vector<16x128xf32>
    %c6 = arith.constant 6 : index
    %c0_36 = arith.constant 0 : index
    %53 = vector.load %arg6[%c6, %c0_36] : memref<9x128xf32, #tpu.memory_space<vmem>>, vector<1x128xf32>
    %54 = vector.broadcast %53 : vector<1x128xf32> to vector<16x128xf32>
    %55 = arith.mulf %52, %54 : vector<16x128xf32>
    %56 = arith.truncf %55 : vector<16x128xf32> to vector<16x128xbf16>
    %c96 = arith.constant 96 : index
    %c0_37 = arith.constant 0 : index
    %57 = vector.load %arg10[%c96, %c0_37] : memref<144x128xbf16, #tpu.memory_space<vmem>>, vector<16x128xbf16>
    tpu.vector_store %arg10[%c96, %c0_37], %56 {strides = array<i32>} : memref<144x128xbf16, #tpu.memory_space<vmem>>, vector<16x128xbf16>,
    %c0_38 = arith.constant 0 : index
    %c136 = arith.constant 136 : index
    %58 = vector.load %arg9[%c0_38, %c136] : memref<16x265xf32, #tpu.memory_space<vmem>>, vector<16x128xf32>
    %c7 = arith.constant 7 : index
    %c0_39 = arith.constant 0 : index
    %59 = vector.load %arg6[%c7, %c0_39] : memref<9x128xf32, #tpu.memory_space<vmem>>, vector<1x128xf32>
    %60 = vector.broadcast %59 : vector<1x128xf32> to vector<16x128xf32>
    %61 = arith.mulf %58, %60 : vector<16x128xf32>
    %62 = arith.truncf %61 : vector<16x128xf32> to vector<16x128xbf16>
    %c112 = arith.constant 112 : index
    %c0_40 = arith.constant 0 : index
    %63 = vector.load %arg10[%c112, %c0_40] : memref<144x128xbf16, #tpu.memory_space<vmem>>, vector<16x128xbf16>
    tpu.vector_store %arg10[%c112, %c0_40], %62 {strides = array<i32>} : memref<144x128xbf16, #tpu.memory_space<vmem>>, vector<16x128xbf16>,
    %c0_41 = arith.constant 0 : index
    %c137 = arith.constant 137 : index
    %64 = vector.load %arg9[%c0_41, %c137] : memref<16x265xf32, #tpu.memory_space<vmem>>, vector<16x128xf32>
    %c8 = arith.constant 8 : index
    %c0_42 = arith.constant 0 : index
    %65 = vector.load %arg6[%c8, %c0_42] : memref<9x128xf32, #tpu.memory_space<vmem>>, vector<1x128xf32>
    %66 = vector.broadcast %65 : vector<1x128xf32> to vector<16x128xf32>
    %67 = arith.mulf %64, %66 : vector<16x128xf32>
    %68 = arith.truncf %67 : vector<16x128xf32> to vector<16x128xbf16>
    %c128_43 = arith.constant 128 : index
    %c0_44 = arith.constant 0 : index
    %69 = vector.load %arg10[%c128_43, %c0_44] : memref<144x128xbf16, #tpu.memory_space<vmem>>, vector<16x128xbf16>
    tpu.vector_store %arg10[%c128_43, %c0_44], %68 {strides = array<i32>} : memref<144x128xbf16, #tpu.memory_space<vmem>>, vector<16x128xbf16>,
    %c0_45 = arith.constant 0 : index
    %c0_46 = arith.constant 0 : index
    %70 = vector.load %arg10[%c0_45, %c0_46] : memref<144x128xbf16, #tpu.memory_space<vmem>>, vector<144x128xbf16>
    %cst_47 = arith.constant dense<0.000000e+00> : vector<8x128xf32>
    %71 = tpu.matmul %13, %70, %cst_47 {dimension_numbers = #tpu.dot_dimension_numbers<[1], [0], [0], [1], [0, 0, 1, 1], [], []>} : vector<8x144xbf16>, vector<144x128xbf16>, vector<8x128xf32> -> vector<8x128xf32>
    %c0_48 = arith.constant 0 : index
    %c0_49 = arith.constant 0 : index
    %72 = vector.load %arg5[%c0_48, %c0_49] : memref<8x1xf32, #tpu.memory_space<vmem>>, vector<8x1xf32>
    %73 = vector.broadcast %72 : vector<8x1xf32> to vector<8x128xf32>
    %74 = arith.addf %71, %73 : vector<8x128xf32>
    %c0_50 = arith.constant 0 : index
    %c0_51 = arith.constant 0 : index
    %c0_52 = arith.constant 0 : index
    %75 = vector.load %arg7[%c0_50, %c0_51, %c0_52] : memref<1x8x128xf32, #tpu.memory_space<vmem>>, vector<1x8x128xf32>
    %76 = vector.shape_cast %75 : vector<1x8x128xf32> to vector<8x128xf32>
    %77 = arith.addf %74, %76 : vector<8x128xf32>
    %c0_53 = arith.constant 0 : index
    %c0_54 = arith.constant 0 : index
    %c0_55 = arith.constant 0 : index
    %78 = vector.load %arg8[%c0_53, %c0_54, %c0_55] : memref<1x8x128xf32, #tpu.memory_space<vmem>>, vector<1x8x128xf32>
    %79 = vector.shape_cast %78 : vector<1x8x128xf32> to vector<8x128xf32>
    %80 = vector.shape_cast %77 : vector<8x128xf32> to vector<1x8x128xf32>
    tpu.vector_store %arg8[%c0_53, %c0_54, %c0_55], %80 {strides = array<i32>} : memref<1x8x128xf32, #tpu.memory_space<vmem>>, vector<1x8x128xf32>,
    return
  }
  func.func @transform_0(%arg0: i32) -> (i32, i32, i32) {
    %c0_i32 = arith.constant 0 : i32
    %c0_i32_0 = arith.constant 0 : i32
    %c0_i32_1 = arith.constant 0 : i32
    return %arg0, %c0_i32, %c0_i32_0 : i32, i32, i32
  }
  func.func @transform_1(%arg0: i32) -> (i32, i32) {
    %c0_i32 = arith.constant 0 : i32
    %c0_i32_0 = arith.constant 0 : i32
    %c0_i32_1 = arith.constant 0 : i32
    return %c0_i32, %c0_i32_0 : i32, i32
  }
  func.func @transform_2(%arg0: i32) -> (i32, i32) {
    %c0_i32 = arith.constant 0 : i32
    %c0_i32_0 = arith.constant 0 : i32
    %c0_i32_1 = arith.constant 0 : i32
    return %c0_i32, %c0_i32_0 : i32, i32
  }
  func.func @transform_3(%arg0: i32) -> (i32, i32) {
    %c0_i32 = arith.constant 0 : i32
    %c0_i32_0 = arith.constant 0 : i32
    %c0_i32_1 = arith.constant 0 : i32
    return %c0_i32, %c0_i32_0 : i32, i32
  }
  func.func @transform_4(%arg0: i32) -> (i32, i32) {
    %c0_i32 = arith.constant 0 : i32
    %c0_i32_0 = arith.constant 0 : i32
    %c0_i32_1 = arith.constant 0 : i32
    return %c0_i32, %c0_i32_0 : i32, i32
  }
  func.func @transform_5(%arg0: i32) -> (i32, i32) {
    %c0_i32 = arith.constant 0 : i32
    %c0_i32_0 = arith.constant 0 : i32
    %c0_i32_1 = arith.constant 0 : i32
    return %c0_i32, %c0_i32_0 : i32, i32
  }
  func.func @transform_6(%arg0: i32) -> (i32, i32, i32) {
    %c0_i32 = arith.constant 0 : i32
    %c0_i32_0 = arith.constant 0 : i32
    %c0_i32_1 = arith.constant 0 : i32
    return %arg0, %c0_i32, %c0_i32_0 : i32, i32, i32
  }
  func.func @transform_7(%arg0: i32) -> (i32, i32, i32) {
    %c0_i32 = arith.constant 0 : i32
    %c0_i32_0 = arith.constant 0 : i32
    %c0_i32_1 = arith.constant 0 : i32
    return %arg0, %c0_i32, %c0_i32_0 : i32, i32, i32
  }
}

</mosaic_0001>

<bundles_post_ra>
// kernel: residual_block_forward.6
= control target key start
LH: loop header
LB: loop body
LE: loop exit
PB: predicated region body
PF: predicated region fallthrough
CT: control target
= control target key end

     0   :  { %s326_s12 = smov 0   ;;  %s349_s0 = inlined_call_operand.vmem [shape: f32[2,16,256], index: 0, kind: input, shape index: {}]   ;;  %s350_s1 = inlined_call_operand.vmem [shape: bf16[8,16], index: 1, kind: input, shape index: {}]   ;;  %s351_s2 = inlined_call_operand.vmem [shape: f32[8,1], index: 2, kind: input, shape index: {}]   ;;  %s352_s3 = inlined_call_operand.vmem [shape: f32[2,8,256], index: 3, kind: output, shape index: {}]  }
   0x1 LB: > { %s272_s13 = sadd.s32 4294967295, %s303_s12   ;;  %p276_p0 = scmp.ge.s32.totalorder %s303_s12, 1  ;;  %s303_s12 = sphi %s326_s12, %s13_s12  }
   0x2   : > { %p137_p1 = scmp.lt.s32.totalorder %s303_s12, 3 }
   0x4   : > { %p138_p2 = pnand %p276_p0, %p137_p1 }
   0x5   : > { %p161_p3 = scmp.lt.s32.totalorder (!%p138_p2), %s272_s13, 1 }
   0x6   : > { %141 = sbr.rel (%p138_p2) target bundleno = 155 (0x9b), region = 32 }
   0xb   : > { %v179_v0 = vld [vmem:[%s351_s2] sm:$0xff]  ;;  %v305_v1 = vmov 0   ;;  %s354_s13 = smov (!%p161_p3, %s272_s13), 1  ;;  %vm185_vm0 = vcmask 130048  }
   0xc   : > { %296 = vset.pattern.permute.xlu0 %v305_v1  ;;  %s285_s16 = sshll.u32 %s354_s13, 5  ;;  %v176_v8 = vld [vmem:[%s350_s1] sm:$0xf]  ;;  %s286_s22 = sshll.u32 %s354_s13, 4 }
   0xd   : > { %182 = vperm.xlu0 %296, %v179_v0   ;;  %s165_s19 = scalar_lea.vmem %s349_s0, %s285_s16  ;;  %s170_s25 = scalar_lea.vmem %s352_s3, %s286_s22 }
   0xe   : > { %v172_v2 = vld [vmem:[%s165_s19] sm:$0xff]  ;;  %v174_v3 = vld [vmem:[%s165_s19 + $0x10] sm:$0xff]  ;;  %v173_v4 = vld [vmem:[%s165_s19 + $0x8] sm:$0xff] }
   0xf   : > { %v177_v5 = vpack.c.bf16 %v174_v3, %v172_v2  ;;  %v175_v6 = vld [vmem:[%s165_s19 + $0x18] sm:$0xff] }
  0x10   : > { %v178_v7 = vpack.c.bf16 %v175_v6, %v173_v4 }
  0x11   : > { %196 = vmatpush.bf16.msra.mxu0 %v177_v5 }
  0x12   : > { %209 = vmatpush.bf16.msra.mxu1 %v178_v7 }
  0x14   : > { %281 = vmatmul.msk.bf16.vlgmr.msra.gmra.mxu0 %vm185_vm0, %v176_v8 }
  0x15   : > { %282 = vmatmul.msk.bf16.vlgmr.msra.gmra.mxu1 %vm185_vm0, %v176_v8 }
  0x7f   : > { %v183_v9 = vpop.permute.xlu0 %182 }
  0x91   : > { %v198_v10 = vpop.f32.mrf.mxu0 }
  0x92   : > { %v199_v11 = vadd.f32 %v198_v10, %v183_v9  ;;  %v211_v12 = vpop.f32.mrf.mxu1 }
  0x93   : > { %v212_v13 = vadd.f32 %v211_v12, %v183_v9 }
  0x94   : > { %215 = vst [vmem:[%s170_s25] sm:$0xff] %v199_v11 }
  0x95   : > { %216 = vst [vmem:[%s170_s25 + $0x8] sm:$0xff] %v212_v13 }
  0x99   : > { %v200_v14 = vpop.f32.mrf.mxu0 }
  0x9a   : > { %v213_v15 = vpop.f32.mrf.mxu1 }
  0x9b PF: > { %s13_s12 = sadd.s32 1, %s303_s12  }
  0x9c   : > { %p10_p4 = scmp.ge.s32.totalorder %s13_s12, 4  }
  0x9e   :  { %12 = sbr.rel (!%p10_p4) target bundleno = 1 (0x1), region = 62 }

// kernel: residual_block_forward.7
= control target key start
LH: loop header
LB: loop body
LE: loop exit
PB: predicated region body
PF: predicated region fallthrough
CT: control target
= control target key end

     0   :  { %s1175_s21 = smov 0   ;;  %s1404_s0 = inlined_call_operand.vmem [shape: f32[2,16,256], index: 0, kind: input, shape index: {}]   ;;  %s1405_s1 = inlined_call_operand.vmem [shape: f32[16,1], index: 1, kind: input, shape index: {}]   ;;  %s1406_s2 = inlined_call_operand.vmem [shape: f32[16,1], index: 2, kind: input, shape index: {}]   ;;  %s1407_s3 = inlined_call_operand.vmem [shape: bf16[8,144], index: 3, kind: input, shape index: {}]   ;;  %s1408_s4 = inlined_call_operand.vmem [shape: f32[8,1], index: 4, kind: input, shape index: {}]   ;;  %s1409_s5 = inlined_call_operand.vmem [shape: f32[9,256], index: 5, kind: input, shape index: {}]   ;;  %s1410_s6 = inlined_call_operand.vmem [shape: f32[2,8,256], index: 6, kind: output, shape index: {}]  }
   0x1 LB: > { %s990_s22 = sadd.s32 4294967295, %s1128_s21   ;;  %p994_p0 = scmp.ge.s32.totalorder %s1128_s21, 1  ;;  %s1128_s21 = sphi %s1175_s21, %s16_s21  }
   0x2   : > { %p212_p1 = scmp.lt.s32.totalorder %s1128_s21, 3 }
   0x4   : > { %p213_p2 = pnand %p994_p0, %p212_p1 }
   0x5   : > { %s1131_s29 = smov (!%p213_p2), 16   ;;  %s1132_s14 = smov (!%p213_p2), 15  }
   0x6   : > { %216 = sbr.rel (%p213_p2) target bundleno = 493 (0x1ed), region = 44  ;;  %s1133_s17 = smov (!%p213_p2), 1  }
   0x7   : > { %s1134_s18 = smov (!%p213_p2), 127   ;;  %s1135_s25 = smov (!%p213_p2), 113  }
   0x8   : > { %s1136_s28 = smov (!%p213_p2), 112   ;;  %s1137_s30 = smov (!%p213_p2), 111  }
   0x9   : > { %s1138_s9 = smov (!%p213_p2), 17   ;;  %p242_p3 = scmp.lt.s32.totalorder (!%p213_p2), %s990_s22, 1 }
   0xb   : > { %v273_v0 = vld [vmem:[%s1406_s2] sm:$0xff]  ;;  %v1130_v2 = vmov 0   ;;  %v274_v5 = vld [vmem:[%s1406_s2 + $0x8] sm:$0xff]  ;;  %v1005_v26 = vld [vmem:[%s1409_s5 + $0x10] ss:$8 sm:$0x3] }
   0xc   : > { %v257_v1 = vld [vmem:[%s1405_s1] sm:$0xff]  ;;  %1121 = vset.pattern.permute.xlu1 %v1130_v2  ;;  %1120 = vset.pattern.permute.xlu0 %v1130_v2  ;;  %v258_v6 = vld [vmem:[%s1405_s1 + $0x8] sm:$0xff]  ;;  %v714_v27 = vperm.slane %v1005_v26, 1  ;;  %v713_v28 = vperm.slane %v1005_v26, 0  ;;  %vm304_vm0 = vcmask 138240   ;;  %v1139_v29 = vmov 0.0  }
   0xd   : > { %v1004_v3 = vld [vmem:[%s1409_s5 + $0x7] ss:$8 sm:$0x3]  ;;  %277 = vperm.xlu1 %1121, %v273_v0   ;;  %261 = vperm.xlu0 %1120, %v257_v1   ;;  %v1003_v8 = vld [vmem:[%s1409_s5 + $0x6] ss:$8 sm:$0x3] }
   0xe   : > { %v658_v4 = vperm.slane %v1004_v3, 0  ;;  %v659_v7 = vperm.slane %v1004_v3, 1  ;;  %v1002_v9 = vld [vmem:[%s1409_s5 + $0x5] ss:$8 sm:$0x3]  ;;  %v604_v10 = vperm.slane %v1003_v8, 1 }
   0xf   : > { %v603_v11 = vperm.slane %v1003_v8, 0  ;;  %v548_v12 = vperm.slane %v1002_v9, 0  ;;  %v1001_v13 = vld [vmem:[%s1409_s5 + $0x3] ss:$8 sm:$0x3]  ;;  %v549_v15 = vperm.slane %v1002_v9, 1 }
  0x10   : > { %660 = vrot.lane.b32.xlu2 %v658_v4, %s1131_s29  ;;  %v485_v14 = vperm.slane %v1001_v13, 0  ;;  %v486_v16 = vperm.slane %v1001_v13, 1  ;;  %v1000_v17 = vld [vmem:[%s1409_s5 + $0x2] ss:$8 sm:$0x3]  ;;  %305 = vst.msk [vmem:[#allocation2 + $0x18] sm:$0xff] %vm304_vm0, %v1139_v29 }
  0x11   : > { %v999_v18 = vld [vmem:[%s1409_s5 + $0x1] ss:$8 sm:$0x3]  ;;  %v431_v19 = vperm.slane %v1000_v17, 1  ;;  %v430_v20 = vperm.slane %v1000_v17, 0  ;;  %306 = vst.msk [vmem:[#allocation2 + $0x38] sm:$0xff] %vm304_vm0, %v1139_v29 }
  0x12   : > { %v375_v21 = vperm.slane %v999_v18, 0  ;;  %v317_v22 = vld [vmem:[%s1409_s5] ss:$8 sm:$0x3]  ;;  %v376_v24 = vperm.slane %v999_v18, 1  ;;  %s1412_s22 = smov (!%p242_p3, %s990_s22), 1 }
  0x13   : > { %v319_v23 = vperm.slane %v317_v22, 0  ;;  %v320_v25 = vperm.slane %v317_v22, 1  ;;  %s1082_s10 = sshll.u32 %s1412_s22, 5  ;;  %vm468_vm5 = vcmask 121856   ;;  %vm523_vm6 = vcmask 7168  }
  0x14   : > { %s246_s13 = scalar_lea.vmem %s1404_s0, %s1082_s10  ;;  %vm413_vm7 = vcmask 130048   ;;  %vm491_vm8 = vcmask 1039360   ;;  %vm436_vm9 = vcmask 924672   ;;  %vm381_vm10 = vcmask 916480  }
  0x15   : > { %282 = vperm.xlu1 %1121, %v274_v5   ;;  %266 = vperm.xlu0 %1120, %v258_v6   ;;  %v253_v38 = vld [vmem:[%s246_s13] sm:$0xff]  ;;  %v254_v39 = vld [vmem:[%s246_s13 + $0x8] sm:$0xff]  ;;  %v255_v48 = vld [vmem:[%s246_s13 + $0x10] sm:$0xff]  ;;  %vm325_vm11 = vcmask 908288   ;;  %vm356_vm12 = vcmask 1043456  }
  0x16   : > { %v256_v49 = vld [vmem:[%s246_s13 + $0x18] sm:$0xff] }
  0x17   : > { %v1239_v31 = vld [vmem:[#allocation2 + $0x18] sm:$0xff] }
  0x18   : > { %662 = vrot.lane.b32.xlu2 %v659_v7, %s1131_s29  ;;  %v1241_v32 = vld [vmem:[#allocation2 + $0x38] sm:$0xff] }
  0x1d   : > { %607 = vrot.lane.b32.xlu1 %v604_v10, %s1132_s14  ;;  %605 = vrot.lane.b32.xlu0 %v603_v11, %s1132_s14 }
  0x20   : > { %550 = vrot.lane.b32.xlu2 %v548_v12, %s1133_s17 }
  0x25   : > { %487 = vrot.lane.b32.xlu1 %v485_v14, %s1134_s18  ;;  %552 = vrot.lane.b32.xlu0 %v549_v15, %s1133_s17 }
  0x28   : > { %489 = vrot.lane.b32.xlu2 %v486_v16, %s1134_s18 }
  0x2d   : > { %434 = vrot.lane.b32.xlu1 %v431_v19, %s1135_s25  ;;  %432 = vrot.lane.b32.xlu0 %v430_v20, %s1135_s25 }
  0x30   : > { %377 = vrot.lane.b32.xlu2 %v375_v21, %s1136_s28 }
  0x35   : > { %321 = vrot.lane.b32.xlu1 %v319_v23, %s1137_s30  ;;  %379 = vrot.lane.b32.xlu0 %v376_v24, %s1136_s28 }
  0x38   : > { %323 = vrot.lane.b32.xlu2 %v320_v25, %s1137_s30 }
  0x3d   : > { %717 = vrot.lane.b32.xlu1 %v714_v27, %s1138_s9  ;;  %715 = vrot.lane.b32.xlu0 %v713_v28, %s1138_s9 }
  0x6a   : > { %v1237_v30 = vpop.permute.xlu2 %660 }
  0x72   : > { %v1245_v33 = vpop.permute.xlu2 %662 }
  0x73   : > { %v671_v34 = vmul.f32 %v1245_v33, %v1239_v31  ;;  %v674_v35 = vmul.f32 %v1245_v33, %v1241_v32  ;;  %v665_v18 = vsel %vm413_vm7, %v1237_v30, %v1245_v33 }
  0x75   : > { %v678_v36 = vpack.c.bf16 %v674_v35, %v674_v35  ;;  %v676_v37 = vpack.c.bf16 %v671_v34, %v671_v34 }
  0x77   : > { %689 = vrot.lane.b32.xlu2 %v678_v36, %s1136_s28  ;;  %685 = vrot.lane.b32.xlu0 %v676_v37, %s1136_s28 }
  0x7a   : > { %v551_v12 = vpop.permute.xlu2 %550 }
  0x7f   : > { %v278_v40 = vpop.permute.xlu1 %277  ;;  %v262_v41 = vpop.permute.xlu0 %261 }
  0x80   : > { %v269_v42 = vmul.f32 %v262_v41, %v253_v38  ;;  %v270_v43 = vmul.f32 %v262_v41, %v254_v39 }
  0x82   : > { %v285_v44 = vadd.f32 %v278_v40, %v269_v42  ;;  %v286_v45 = vadd.f32 %v278_v40, %v270_v43  ;;  %v490_v33 = vpop.permute.xlu2 %489 }
  0x84   : > { %vm289_vm1 = vcmp.ge.f32.partialorder %v285_v44, 0.0  ;;  %vm290_vm2 = vcmp.ge.f32.partialorder %v286_v45, 0.0  ;;  %v293_v46 = vmul.f32 0.2, %v285_v44  ;;  %v294_v47 = vmul.f32 0.2, %v286_v45 }
  0x86   : > { %v1261_v50 = vsel %vm289_vm1, %v285_v44, %v293_v46  ;;  %v1263_v51 = vsel %vm290_vm2, %v286_v45, %v294_v47 }
  0x87   : > { %v283_v52 = vpop.permute.xlu1 %282  ;;  %v267_v53 = vpop.permute.xlu0 %266  ;;  %v535_v56 = vpack.c.bf16 %v1263_v51, %v1261_v50  ;;  %v669_v20 = vmul.f32 %v1237_v30, %v1261_v50  ;;  %v670_v21 = vmul.f32 %v665_v18, %v1263_v51  ;;  %v498_v34 = vmul.f32 %v490_v33, %v1263_v51 }
  0x88   : > { %v271_v54 = vmul.f32 %v267_v53, %v255_v48  ;;  %v272_v55 = vmul.f32 %v267_v53, %v256_v49  ;;  %v559_v41 = vmul.f32 %v551_v12, %v1261_v50 }
  0x89   : > { %537 = vst [vmem:[#allocation3 + $0x40] sm:$0xff] %v535_v56  ;;  %v675_v27 = vpack.c.bf16 %v670_v21, %v669_v20  ;;  %v503_v40 = vpack.c.bf16 %v498_v34, %v498_v34 }
  0x8a   : > { %v287_v57 = vadd.f32 %v283_v52, %v271_v54  ;;  %v288_v58 = vadd.f32 %v283_v52, %v272_v55 }
  0x8c   : > { %vm291_vm3 = vcmp.ge.f32.partialorder %v287_v57, 0.0  ;;  %vm292_vm4 = vcmp.ge.f32.partialorder %v288_v58, 0.0  ;;  %v295_v59 = vmul.f32 0.2, %v287_v57  ;;  %v296_v60 = vmul.f32 0.2, %v288_v58 }
  0x8e   : > { %v1267_v61 = vsel %vm291_vm3, %v287_v57, %v295_v59  ;;  %v1269_v62 = vsel %vm292_vm4, %v288_v58, %v296_v60 }
  0x8f   : > { %v608_v63 = vpop.permute.xlu1 %607  ;;  %v606_v0 = vpop.permute.xlu0 %605  ;;  %v536_v6 = vpack.c.bf16 %v1269_v62, %v1267_v61  ;;  %v672_v24 = vmul.f32 %v1237_v30, %v1267_v61  ;;  %v673_v25 = vmul.f32 %v665_v18, %v1269_v62  ;;  %v562_v26 = vmul.f32 %v551_v12, %v1267_v61 }
  0x90   : > { %v616_v1 = vmul.f32 %v1239_v31, %v608_v63  ;;  %v619_v2 = vmul.f32 %v1241_v32, %v608_v63  ;;  %v610_v5 = vsel %vm468_vm5, %v606_v0, %v608_v63  ;;  %v614_v7 = vmul.f32 %v606_v0, %v1261_v50 }
  0x91   : > { %538 = vst [vmem:[#allocation3 + $0x48] sm:$0xff] %v536_v6  ;;  %v615_v8 = vmul.f32 %v610_v5, %v1263_v51  ;;  %v677_v29 = vpack.c.bf16 %v673_v25, %v672_v24  ;;  %v617_v35 = vmul.f32 %v606_v0, %v1267_v61  ;;  %v618_v36 = vmul.f32 %v610_v5, %v1269_v62  ;;  %v378_v5 = vpop.permute.xlu2 %377 }
  0x92   : > { %v621_v3 = vpack.c.bf16 %v616_v1, %v616_v1  ;;  %v623_v4 = vpack.c.bf16 %v619_v2, %v619_v2 }
  0x93   : > { %v620_v15 = vpack.c.bf16 %v615_v8, %v614_v7  ;;  %v622_v39 = vpack.c.bf16 %v618_v36, %v617_v35 }
  0x94   : > { %630 = vrot.lane.b32.xlu1 %v621_v3, %s1135_s25  ;;  %634 = vrot.lane.b32.xlu0 %v623_v4, %s1135_s25  ;;  %v501_v3 = vmul.f32 %v490_v33, %v1269_v62 }
  0x96   : > { %v505_v6 = vpack.c.bf16 %v501_v3, %v501_v3 }
  0x97   : > { %v488_v9 = vpop.permute.xlu1 %487  ;;  %v553_v10 = vpop.permute.xlu0 %552 }
  0x98   : > { %v561_v11 = vmul.f32 %v1239_v31, %v553_v10  ;;  %v564_v13 = vmul.f32 %v1241_v32, %v553_v10  ;;  %v555_v16 = vsel %vm523_vm6, %v551_v12, %v553_v10  ;;  %v492_v42 = vsel %vm491_vm8, %v488_v9, %v490_v33 }
  0x99   : > { %v563_v19 = vmul.f32 %v555_v16, %v1269_v62  ;;  %v560_v38 = vmul.f32 %v555_v16, %v1263_v51  ;;  %v496_v45 = vmul.f32 0.0, %v488_v9  ;;  %v497_v46 = vmul.f32 %v492_v42, %v1261_v50  ;;  %v324_v16 = vpop.permute.xlu2 %323 }
  0x9a   : > { %v566_v14 = vpack.c.bf16 %v561_v11, %v561_v11  ;;  %v568_v17 = vpack.c.bf16 %v564_v13, %v564_v13  ;;  %v500_v53 = vmul.f32 %v492_v42, %v1267_v61  ;;  %v386_v10 = vmul.f32 0.0, %v378_v5 }
  0x9b   : > { %v567_v28 = vpack.c.bf16 %v563_v19, %v562_v26  ;;  %v565_v44 = vpack.c.bf16 %v560_v38, %v559_v41  ;;  %v502_v59 = vpack.c.bf16 %v497_v46, %v496_v45  ;;  %v332_v18 = vmul.f32 %v324_v16, %v1263_v51 }
  0x9c   : > { %575 = vrot.lane.b32.xlu2 %v566_v14, %s1134_s18  ;;  %628 = vrot.lane.b32.xlu0 %v620_v15, %s1135_s25  ;;  %v504_v1 = vpack.c.bf16 %v500_v53, %v496_v45 }
  0x9d   : > { %579 = vrot.lane.b32.xlu1 %v568_v17, %s1134_s18 }
  0x9f   : > { %v435_v22 = vpop.permute.xlu1 %434  ;;  %v433_v23 = vpop.permute.xlu0 %432 }
  0xa0   : > { %v437_v43 = vsel %vm436_vm9, %v433_v23, %v435_v22  ;;  %v441_v47 = vmul.f32 0.0, %v433_v23  ;;  %v446_v2 = vmul.f32 %v435_v22, %v1269_v62  ;;  %v443_v4 = vmul.f32 %v435_v22, %v1263_v51 }
  0xa1   : > { %v442_v48 = vmul.f32 %v437_v43, %v1261_v50  ;;  %v445_v11 = vmul.f32 %v437_v43, %v1267_v61  ;;  %v337_v22 = vpack.c.bf16 %v332_v18, %v332_v18 }
  0xa2   : > { %v450_v7 = vpack.c.bf16 %v446_v2, %v446_v2  ;;  %v448_v9 = vpack.c.bf16 %v443_v4, %v443_v4 }
  0xa3   : > { %v447_v60 = vpack.c.bf16 %v442_v48, %v441_v47  ;;  %v449_v14 = vpack.c.bf16 %v445_v11, %v441_v47 }
  0xa4   : > { %683 = vrot.lane.b32.xlu2 %v675_v27, %s1136_s28  ;;  %577 = vrot.lane.b32.xlu0 %v567_v28, %s1134_s18 }
  0xa5   : > { %687 = vrot.lane.b32.xlu1 %v677_v29, %s1136_s28  ;;  %v335_v29 = vmul.f32 %v324_v16, %v1269_v62 }
  0xa7   : > { %v1303_v30 = vpop.permute.xlu1 %321  ;;  %v380_v37 = vpop.permute.xlu0 %379 }
  0xa8   : > { %v382_v8 = vsel %vm381_vm10, %v378_v5, %v380_v37  ;;  %v388_v19 = vmul.f32 %v380_v37, %v1263_v51  ;;  %v391_v20 = vmul.f32 %v380_v37, %v1269_v62  ;;  %v326_v23 = vsel %vm325_vm11, %v1303_v30, %v324_v16 }
  0xa9   : > { %v390_v12 = vmul.f32 %v382_v8, %v1267_v61  ;;  %v387_v13 = vmul.f32 %v382_v8, %v1261_v50  ;;  %v330_v25 = vmul.f32 0.0, %v1303_v30  ;;  %v331_v26 = vmul.f32 %v326_v23, %v1261_v50 }
  0xaa   : > { %v393_v21 = vpack.c.bf16 %v388_v19, %v388_v19  ;;  %v395_v24 = vpack.c.bf16 %v391_v20, %v391_v20 }
  0xab   : > { %v394_v15 = vpack.c.bf16 %v390_v12, %v386_v10  ;;  %v392_v17 = vpack.c.bf16 %v387_v13, %v386_v10  ;;  %v336_v27 = vpack.c.bf16 %v331_v26, %v330_v25 }
  0xac   : > { %632 = vrot.lane.b32.xlu2 %v622_v39, %s1135_s25  ;;  %512 = vrot.lane.b32.xlu0 %v503_v40, %s1133_s17 }
  0xad   : > { %573 = vrot.lane.b32.xlu1 %v565_v44, %s1134_s18 }
  0xaf   : > { %v718_v49 = vpop.permute.xlu1 %717  ;;  %v716_v52 = vpop.permute.xlu0 %715 }
  0xb0   : > { %v719_v54 = vsel %vm304_vm0, %v716_v52, %v718_v49  ;;  %v723_v55 = vmul.f32 %v716_v52, %v1261_v50  ;;  %v726_v57 = vmul.f32 %v716_v52, %v1267_v61  ;;  %v728_v33 = vmul.f32 %v718_v49, %v1241_v32 }
  0xb1   : > { %v724_v56 = vmul.f32 %v719_v54, %v1263_v51  ;;  %v727_v58 = vmul.f32 %v719_v54, %v1269_v62  ;;  %v334_v51 = vmul.f32 %v326_v23, %v1267_v61  ;;  %v725_v34 = vmul.f32 %v718_v49, %v1239_v31  ;;  %v776_v61 = vld [vmem:[%s1408_s4] sm:$0xff] }
  0xb2   : > { %v732_v35 = vpack.c.bf16 %v728_v33, %v728_v33  ;;  %v339_v50 = vpack.c.bf16 %v335_v29, %v335_v29 }
  0xb3   : > { %v729_v63 = vpack.c.bf16 %v724_v56, %v723_v55  ;;  %v731_v0 = vpack.c.bf16 %v727_v58, %v726_v57  ;;  %v338_v28 = vpack.c.bf16 %v334_v51, %v330_v25  ;;  %v730_v36 = vpack.c.bf16 %v725_v34, %v725_v34 }
  0xb4   : > { %510 = vrot.lane.b32.xlu2 %v502_v59, %s1133_s17  ;;  %455 = vrot.lane.b32.xlu0 %v447_v60, %s1132_s14 }
  0xb5   : > { %514 = vrot.lane.b32.xlu1 %v504_v1, %s1133_s17 }
  0xbc   : > { %516 = vrot.lane.b32.xlu2 %v505_v6, %s1133_s17  ;;  %461 = vrot.lane.b32.xlu0 %v450_v7, %s1132_s14  ;;  %s1083_s17 = sshll.u32 %s1412_s22, 4 }
  0xbd   : > { %457 = vrot.lane.b32.xlu1 %v448_v9, %s1132_s14  ;;  %s251_s20 = scalar_lea.vmem %s1410_s6, %s1083_s17 }
  0xc4   : > { %459 = vrot.lane.b32.xlu2 %v449_v14, %s1132_s14  ;;  %404 = vrot.lane.b32.xlu0 %v394_v15, %s1131_s29 }
  0xc5   : > { %400 = vrot.lane.b32.xlu1 %v392_v17, %s1131_s29 }
  0xcc   : > { %402 = vrot.lane.b32.xlu2 %v393_v21, %s1131_s29  ;;  %346 = vrot.lane.b32.xlu0 %v337_v22, %s1138_s9 }
  0xcd   : > { %406 = vrot.lane.b32.xlu1 %v395_v24, %s1131_s29 }
  0xd1   : > { %v690_v32 = vpop.permute.xlu2 %689 }
  0xd4   : > { %737 = vrot.lane.b32.xlu0 %v729_v63, %s1137_s30  ;;  %344 = vrot.lane.b32.xlu2 %v336_v27, %s1138_s9  ;;  %v694_v63 = vrot.slane %v690_v32, 4 }
  0xd5   : > { %348 = vrot.lane.b32.xlu1 %v338_v28, %s1138_s9 }
  0xdc   : > { %743 = vrot.lane.b32.xlu0 %v732_v35, %s1137_s30  ;;  %350 = vrot.lane.b32.xlu2 %v339_v50, %s1138_s9 }
  0xdd   : > { %739 = vrot.lane.b32.xlu1 %v730_v36, %s1137_s30 }
  0xe4   : > { %741 = vrot.lane.b32.xlu2 %v731_v0, %s1137_s30 }
  0xe5   : > { %779 = vperm.xlu1 %1121, %v776_v61  }
  0xe9   : > { %v686_v30 = vpop.permute.xlu0 %685 }
  0xea   : > { %v692_v31 = vrot.slane %v686_v30, 4 }
  0xf6   : > { %v576_v62 = vpop.permute.xlu2 %575 }
  0xf7   : > { %v582_v10 = vrot.slane %v576_v62, 4 }
  0xfe   : > { %v684_v37 = vpop.permute.xlu2 %683 }
  0xff   : > { %v691_v38 = vrot.slane %v684_v37, 4 }
 0x101   : > { %v695_v39 = vsel %vm356_vm12, %v691_v38, %v692_v31 }
 0x102   : > { %v697_v40 = vsel %vm381_vm10, %v684_v37, %v695_v39  ;;  %v1093_v37 = vld [vmem:[#allocation3 + $0x44] sm:$0xf0] }
 0x103   : > { %702 = vst [vmem:[#allocation3 + $0x70] sm:$0xff] %v697_v40  ;;  %v1042_v40 = vld [vmem:[#allocation3 + $0x48] sm:$0xf0] }
 0x106   : > { %v631_v41 = vpop.permute.xlu1 %630  ;;  %v635_v42 = vpop.permute.xlu0 %634 }
 0x107   : > { %v639_v43 = vrot.slane %v635_v42, 4  ;;  %v633_v44 = vpop.permute.xlu2 %632  ;;  %v637_v49 = vrot.slane %v631_v41, 4 }
 0x108   : > { %v638_v45 = vrot.slane %v633_v44, 4 }
 0x10a   : > { %v643_v46 = vsel %vm356_vm12, %v638_v45, %v639_v43  ;;  %v1064_v15 = vld [vmem:[#allocation3 + $0x70] sm:$0xf]  ;;  %v1098_v19 = vld [vmem:[#allocation3 + $0x74] sm:$0xf]  ;;  %v1040_v43 = vld [vmem:[#allocation3 + $0x40] sm:$0xf] }
 0x10b   : > { %v644_v47 = vsel %vm436_vm9, %v633_v44, %v643_v46  ;;  %v1041_v45 = vor.u32 %v1093_v37, %v1040_v43  ;;  %v1092_v46 = vld [vmem:[#allocation3 + $0x44] sm:$0xf] }
 0x10c   : > { %648 = vst [vmem:[#allocation3 + $0x68] sm:$0xff] %v644_v47 }
 0x10e   : > { %v629_v48 = vpop.permute.xlu0 %628 }
 0x10f   : > { %v636_v52 = vrot.slane %v629_v48, 4  ;;  %v580_v53 = vpop.permute.xlu1 %579  ;;  %v511_v54 = vpop.permute.xlu2 %510 }
 0x110   : > { %v584_v58 = vrot.slane %v580_v53, 4  ;;  %v518_v7 = vrot.slane %v511_v54, 4 }
 0x111   : > { %v640_v55 = vsel %vm356_vm12, %v636_v52, %v637_v49  ;;  %v1045_v52 = vor.u32 %v1092_v46, %v1042_v40 }
 0x112   : > { %v642_v56 = vsel %vm436_vm9, %v629_v48, %v640_v55 }
 0x113   : > { %647 = vst [vmem:[#allocation3 + $0x60] sm:$0xff] %v642_v56  ;;  %v1097_v51 = vld [vmem:[#allocation3 + $0x64] sm:$0xf0]  ;;  %v1058_v27 = vld [vmem:[#allocation3 + $0x68] sm:$0xf0] }
 0x116   : > { %v578_v57 = vpop.permute.xlu0 %577 }
 0x117   : > { %v583_v59 = vrot.slane %v578_v57, 4  ;;  %v688_v60 = vpop.permute.xlu1 %687  ;;  %v517_v3 = vpop.permute.xlu2 %516 }
 0x118   : > { %v693_v0 = vrot.slane %v688_v60, 4  ;;  %v521_v28 = vrot.slane %v517_v3, 4 }
 0x119   : > { %v588_v1 = vsel %vm356_vm12, %v583_v59, %v584_v58 }
 0x11a   : > { %v589_v2 = vsel %vm491_vm8, %v578_v57, %v588_v1  ;;  %v698_v4 = vsel %vm356_vm12, %v693_v0, %v694_v63  ;;  %v1056_v24 = vld [vmem:[#allocation3 + $0x60] sm:$0xf]  ;;  %v1096_v25 = vld [vmem:[#allocation3 + $0x64] sm:$0xf] }
 0x11b   : > { %593 = vst [vmem:[#allocation3 + $0x58] sm:$0xff] %v589_v2  ;;  %v699_v5 = vsel %vm381_vm10, %v688_v60, %v698_v4  ;;  %v1057_v33 = vor.u32 %v1097_v51, %v1056_v24  ;;  %v1061_v34 = vor.u32 %v1096_v25, %v1058_v27 }
 0x11c   : > { %703 = vst [vmem:[#allocation3 + $0x78] sm:$0xff] %v699_v5 }
 0x11e   : > { %v513_v6 = vpop.permute.xlu0 %512 }
 0x11f   : > { %v519_v8 = vrot.slane %v513_v6, 4  ;;  %v574_v9 = vpop.permute.xlu1 %573  ;;  %v460_v17 = vpop.permute.xlu2 %459 }
 0x120   : > { %v581_v12 = vrot.slane %v574_v9, 4  ;;  %v465_v41 = vrot.slane %v460_v17, 4 }
 0x121   : > { %v522_v11 = vsel %vm356_vm12, %v518_v7, %v519_v8 }
 0x122   : > { %v524_v13 = vsel %vm523_vm6, %v511_v54, %v522_v11  ;;  %v585_v14 = vsel %vm356_vm12, %v581_v12, %v582_v10  ;;  %v1095_v50 = vld [vmem:[#allocation3 + $0x54] sm:$0xf0]  ;;  %v1050_v62 = vld [vmem:[#allocation3 + $0x58] sm:$0xf0] }
 0x123   : > { %529 = vst [vmem:[#allocation3 + $0x30] sm:$0xff] %v524_v13  ;;  %v587_v16 = vsel %vm491_vm8, %v574_v9, %v585_v14  ;;  %v1099_v18 = vld [vmem:[#allocation3 + $0x74] sm:$0xf0]  ;;  %v1066_v20 = vld [vmem:[#allocation3 + $0x78] sm:$0xf0] }
 0x124   : > { %592 = vst [vmem:[#allocation3 + $0x50] sm:$0xff] %v587_v16  ;;  %v1065_v21 = vor.u32 %v1099_v18, %v1064_v15  ;;  %v1069_v22 = vor.u32 %v1098_v19, %v1066_v20 }
 0x126   : > { %v456_v23 = vpop.permute.xlu0 %455  ;;  %881 = vmatpush.bf16.msra.mxu0 %v1065_v21  ;;  %907 = vmatpush.bf16.msra.mxu2 %v1069_v22 }
 0x127   : > { %v515_v26 = vpop.permute.xlu1 %514  ;;  %v403_v38 = vpop.permute.xlu2 %402  ;;  %v463_v47 = vrot.slane %v456_v23, 4 }
 0x128   : > { %v520_v29 = vrot.slane %v515_v26, 4  ;;  %v409_v3 = vrot.slane %v403_v38, 4 }
 0x12a   : > { %v525_v35 = vsel %vm356_vm12, %v520_v29, %v521_v28  ;;  %882 = vmatpush.bf16.msra.mxu0 %v1057_v33  ;;  %908 = vmatpush.bf16.msra.mxu2 %v1061_v34  ;;  %v1032_v55 = vld [vmem:[#allocation3 + $0x30] sm:$0xf]  ;;  %v1090_v58 = vld [vmem:[#allocation3 + $0x34] sm:$0xf] }
 0x12b   : > { %v526_v36 = vsel %vm523_vm6, %v515_v26, %v525_v35  ;;  %v1048_v61 = vld [vmem:[#allocation3 + $0x50] sm:$0xf]  ;;  %v1094_v32 = vld [vmem:[#allocation3 + $0x54] sm:$0xf] }
 0x12c   : > { %530 = vst [vmem:[#allocation3 + $0x38] sm:$0xff] %v526_v36  ;;  %v1049_v30 = vor.u32 %v1095_v50, %v1048_v61  ;;  %v1053_v31 = vor.u32 %v1094_v32, %v1050_v62 }
 0x12e   : > { %v462_v39 = vpop.permute.xlu0 %461  ;;  %883 = vmatpush.bf16.msra.mxu0 %v1049_v30  ;;  %909 = vmatpush.bf16.msra.mxu2 %v1053_v31  ;;  %v301_v31 = vld [vmem:[%s1407_s3] sm:$0xff] }
 0x12f   : > { %v466_v42 = vrot.slane %v462_v39, 4  ;;  %v458_v44 = vpop.permute.xlu1 %457  ;;  %v345_v1 = vpop.permute.xlu2 %344 }
 0x130   : > { %v464_v48 = vrot.slane %v458_v44, 4  ;;  %v352_v14 = vrot.slane %v345_v1, 4 }
 0x131   : > { %v470_v49 = vsel %vm356_vm12, %v465_v41, %v466_v42  ;;  %v783_v42 = vunpack.c.l.b16 %v301_v31 }
 0x132   : > { %v471_v53 = vsel %vm468_vm5, %v460_v17, %v470_v49  ;;  %v467_v54 = vsel %vm356_vm12, %v463_v47, %v464_v48  ;;  %884 = vmatpush.bf16.msra.mxu0 %v1041_v45  ;;  %910 = vmatpush.bf16.msra.mxu2 %v1045_v52 }
 0x133   : > { %475 = vst [vmem:[#allocation3 + $0x28] sm:$0xff] %v471_v53  ;;  %v469_v56 = vsel %vm468_vm5, %v456_v23, %v467_v54  ;;  %v1091_v57 = vld [vmem:[#allocation3 + $0x34] sm:$0xf0]  ;;  %v1034_v59 = vld [vmem:[#allocation3 + $0x38] sm:$0xf0]  ;;  %v785_v53 = vpack.c.b16 %v783_v42, %v783_v42  ;;  %v784_v54 = vunpack.c.h.b16 %v301_v31 }
 0x134   : > { %474 = vst [vmem:[#allocation3 + $0x20] sm:$0xff] %v469_v56  ;;  %v1033_v60 = vor.u32 %v1091_v57, %v1032_v55  ;;  %v1037_v63 = vor.u32 %v1090_v58, %v1034_v59 }
 0x136   : > { %v405_v0 = vpop.permute.xlu0 %404  ;;  %885 = vmatpush.bf16.msra.mxu0 %v1033_v60  ;;  %911 = vmatpush.bf16.msra.mxu2 %v1037_v63  ;;  %v786_v63 = vpack.c.b16 %v784_v54, %v784_v54 }
 0x137   : > { %v401_v2 = vpop.permute.xlu1 %400  ;;  %v410_v17 = vrot.slane %v405_v0, 4  ;;  %v351_v20 = vpop.permute.xlu2 %350 }
 0x138   : > { %v408_v4 = vrot.slane %v401_v2, 4  ;;  %v355_v26 = vrot.slane %v351_v20, 4 }
 0x13a   : > { %v1089_v5 = vld [vmem:[#allocation3 + $0x24] sm:$0xf0]  ;;  %v1026_v6 = vld [vmem:[#allocation3 + $0x28] sm:$0xf0]  ;;  %v412_v7 = vsel %vm356_vm12, %v408_v4, %v409_v3 }
 0x13b   : > { %v414_v8 = vsel %vm413_vm7, %v401_v2, %v412_v7  ;;  %v1024_v9 = vld [vmem:[#allocation3 + $0x20] sm:$0xf]  ;;  %v1088_v10 = vld [vmem:[#allocation3 + $0x24] sm:$0xf] }
 0x13c   : > { %419 = vst [vmem:[#allocation3 + $0x10] sm:$0xff] %v414_v8  ;;  %v1025_v11 = vor.u32 %v1089_v5, %v1024_v9  ;;  %v1029_v12 = vor.u32 %v1088_v10, %v1026_v6 }
 0x13e   : > { %v347_v13 = vpop.permute.xlu0 %346  ;;  %886 = vmatpush.bf16.msra.mxu0 %v1025_v11  ;;  %912 = vmatpush.bf16.msra.mxu2 %v1029_v12 }
 0x13f   : > { %v353_v15 = vrot.slane %v347_v13, 4  ;;  %v407_v16 = vpop.permute.xlu1 %406  ;;  %v742_v29 = vpop.permute.xlu2 %741 }
 0x140   : > { %v411_v19 = vrot.slane %v407_v16, 4  ;;  %v747_v62 = vrot.slane %v742_v29, 4 }
 0x141   : > { %v357_v18 = vsel %vm356_vm12, %v352_v14, %v353_v15 }
 0x142   : > { %v359_v21 = vsel %vm304_vm0, %v345_v1, %v357_v18  ;;  %v415_v22 = vsel %vm356_vm12, %v410_v17, %v411_v19 }
 0x143   : > { %364 = vst [vmem:[#allocation3] sm:$0xff] %v359_v21  ;;  %v416_v23 = vsel %vm413_vm7, %v405_v0, %v415_v22  ;;  %v1016_v28 = vld [vmem:[#allocation3 + $0x10] sm:$0xf]  ;;  %v1086_v35 = vld [vmem:[#allocation3 + $0x14] sm:$0xf] }
 0x144   : > { %420 = vst [vmem:[#allocation3 + $0x18] sm:$0xff] %v416_v23 }
 0x146   : > { %v738_v24 = vpop.permute.xlu0 %737 }
 0x147   : > { %v349_v25 = vpop.permute.xlu1 %348  ;;  %v745_v38 = vrot.slane %v738_v24, 4 }
 0x148   : > { %v354_v51 = vrot.slane %v349_v25, 4 }
 0x14a   : > { %v360_v27 = vsel %vm356_vm12, %v354_v51, %v355_v26  ;;  %v1008_v44 = vld [vmem:[#allocation3] sm:$0xf]  ;;  %v1084_v47 = vld [vmem:[#allocation3 + $0x4] sm:$0xf] }
 0x14b   : > { %v361_v33 = vsel %vm304_vm0, %v349_v25, %v360_v27  ;;  %v1087_v34 = vld [vmem:[#allocation3 + $0x14] sm:$0xf0]  ;;  %v1018_v50 = vld [vmem:[#allocation3 + $0x18] sm:$0xf0] }
 0x14c   : > { %365 = vst [vmem:[#allocation3 + $0x8] sm:$0xff] %v361_v33  ;;  %v1017_v36 = vor.u32 %v1087_v34, %v1016_v28  ;;  %v1021_v61 = vor.u32 %v1086_v35, %v1018_v50 }
 0x14e   : > { %v744_v32 = vpop.permute.xlu0 %743  ;;  %887 = vmatpush.bf16.msra.mxu0 %v1017_v36  ;;  %913 = vmatpush.bf16.msra.mxu2 %v1021_v61 }
 0x14f   : > { %v748_v30 = vrot.slane %v744_v32, 4  ;;  %v740_v37 = vpop.permute.xlu1 %739 }
 0x150   : > { %v746_v40 = vrot.slane %v740_v37, 4 }
 0x151   : > { %v752_v39 = vsel %vm356_vm12, %v747_v62, %v748_v30 }
 0x152   : > { %v753_v41 = vsel %vm325_vm11, %v742_v29, %v752_v39  ;;  %v749_v43 = vsel %vm356_vm12, %v745_v38, %v746_v40 }
 0x153   : > { %757 = vst [vmem:[#allocation3 + $0x88] sm:$0xff] %v753_v41  ;;  %v751_v45 = vsel %vm325_vm11, %v738_v24, %v749_v43  ;;  %v1085_v46 = vld [vmem:[#allocation3 + $0x4] sm:$0xf0]  ;;  %v1010_v48 = vld [vmem:[#allocation3 + $0x8] sm:$0xf0] }
 0x154   : > { %756 = vst [vmem:[#allocation3 + $0x80] sm:$0xff] %v751_v45  ;;  %v1009_v49 = vor.u32 %v1085_v46, %v1008_v44  ;;  %v1013_v52 = vor.u32 %v1084_v47, %v1010_v48 }
 0x156   : > { %888 = vmatpush.bf16.msra.mxu0 %v1009_v49  ;;  %914 = vmatpush.bf16.msra.mxu2 %v1013_v52 }
 0x157   : > { %v780_v1 = vpop.permute.xlu1 %779 }
 0x159   : > { %889 = vmatmul.bf16.vlgmr.msra.gmra.mxu0 %v785_v53  ;;  %915 = vmatmul.bf16.vlgmr.msra.gmra.mxu2 %v785_v53 }
 0x15a   : > { %v1101_v55 = vld [vmem:[#allocation3 + $0x84] sm:$0xf0]  ;;  %v1074_v56 = vld [vmem:[#allocation3 + $0x88] sm:$0xf0] }
 0x15b   : > { %v1072_v57 = vld [vmem:[#allocation3 + $0x80] sm:$0xf]  ;;  %v1100_v58 = vld [vmem:[#allocation3 + $0x84] sm:$0xf] }
 0x15c   : > { %v1073_v59 = vor.u32 %v1101_v55, %v1072_v57  ;;  %v1077_v60 = vor.u32 %v1100_v58, %v1074_v56 }
 0x15e   : > { %901 = vmatpush.bf16.msra.mxu1 %v1073_v59  ;;  %927 = vmatpush.bf16.msra.mxu3 %v1077_v60 }
 0x161   : > { %1078 = vmatmul.msk.bf16.vlgmr.msra.gmra.mxu1 %vm413_vm7, %v786_v63  ;;  %1079 = vmatmul.msk.bf16.vlgmr.msra.gmra.mxu3 %vm413_vm7, %v786_v63 }
 0x1d6   : > { %v890_v0 = vpop.f32.mrf.mxu0 }
 0x1d7   : > { %v891_v3 = vadd.f32 %v890_v0, %v780_v1 }
 0x1dc   : > { %v916_v2 = vpop.f32.mrf.mxu2 }
 0x1dd   : > { %v917_v7 = vadd.f32 %v916_v2, %v780_v1 }
 0x1de   : > { %v903_v4 = vpop.f32.mrf.mxu1  ;;  %v892_v5 = vpop.f32.mrf.mxu0 }
 0x1df   : > { %v904_v6 = vadd.f32 %v903_v4, %v891_v3 }
 0x1e1   : > { %933 = vst [vmem:[%s251_s20] sm:$0xff] %v904_v6 }
 0x1e4   : > { %v918_v8 = vpop.f32.mrf.mxu2  ;;  %v929_v9 = vpop.f32.mrf.mxu3 }
 0x1e5   : > { %v930_v10 = vadd.f32 %v929_v9, %v917_v7 }
 0x1e6   : > { %v905_v11 = vpop.f32.mrf.mxu1 }
 0x1e7   : > { %934 = vst [vmem:[%s251_s20 + $0x8] sm:$0xff] %v930_v10 }
 0x1ec   : > { %v931_v12 = vpop.f32.mrf.mxu3 }
 0x1ed PF: > { %s16_s21 = sadd.s32 1, %s1128_s21  }
 0x1ee   : > { %p13_p4 = scmp.ge.s32.totalorder %s16_s21, 4  }
 0x1f0   :  { %15 = sbr.rel (!%p13_p4) target bundleno = 1 (0x1), region = 81 }

// kernel: residual_block_forward.8
= control target key start
LH: loop header
LB: loop body
LE: loop exit
PB: predicated region body
PF: predicated region fallthrough
CT: control target
= control target key end

     0   :  { %s1246_s24 = smov 0   ;;  %s1478_s0 = inlined_call_operand.vmem [shape: f32[2,16,256], index: 0, kind: input, shape index: {}]   ;;  %s1479_s1 = inlined_call_operand.vmem [shape: f32[16,1], index: 1, kind: input, shape index: {}]   ;;  %s1480_s2 = inlined_call_operand.vmem [shape: f32[16,1], index: 2, kind: input, shape index: {}]   ;;  %s1481_s3 = inlined_call_operand.vmem [shape: bf16[8,144], index: 3, kind: input, shape index: {}]   ;;  %s1482_s4 = inlined_call_operand.vmem [shape: f32[8,1], index: 4, kind: input, shape index: {}]   ;;  %s1483_s5 = inlined_call_operand.vmem [shape: f32[9,256], index: 5, kind: input, shape index: {}]   ;;  %s1484_s6 = inlined_call_operand.vmem [shape: f32[2,8,256], index: 6, kind: input, shape index: {}]   ;;  %s1485_s7 = inlined_call_operand.vmem [shape: f32[2,8,256], index: 7, kind: output, shape index: {}]  }
   0x1 LB: > { %s1053_s25 = sadd.s32 4294967295, %s1194_s24   ;;  %p1057_p0 = scmp.ge.s32.totalorder %s1194_s24, 1  ;;  %s1194_s24 = sphi %s1246_s24, %s17_s24  }
   0x2   : > { %p247_p1 = scmp.lt.s32.totalorder %s1194_s24, 3 }
   0x4   : > { %p248_p2 = pnand %p1057_p0, %p247_p1 }
   0x5   : > { %s1197_s9 = smov (!%p248_p2), 16   ;;  %s1198_s18 = smov (!%p248_p2), 15  }
   0x6   : > { %251 = sbr.rel (%p248_p2) target bundleno = 493 (0x1ed), region = 48  ;;  %s1199_s21 = smov (!%p248_p2), 1  }
   0x7   : > { %s1200_s22 = smov (!%p248_p2), 127   ;;  %s1201_s29 = smov (!%p248_p2), 113  }
   0x8   : > { %s1202_s10 = smov (!%p248_p2), 112   ;;  %s1203_s11 = smov (!%p248_p2), 111  }
   0x9   : > { %s1204_s14 = smov (!%p248_p2), 17   ;;  %p284_p3 = scmp.lt.s32.totalorder (!%p248_p2), %s1053_s25, 1 }
   0xb   : > { %v320_v0 = vld [vmem:[%s1480_s2] sm:$0xff]  ;;  %v1196_v2 = vmov 0   ;;  %v321_v5 = vld [vmem:[%s1480_s2 + $0x8] sm:$0xff]  ;;  %v1070_v26 = vld [vmem:[%s1483_s5 + $0x10] ss:$8 sm:$0x3] }
   0xc   : > { %v304_v1 = vld [vmem:[%s1479_s1] sm:$0xff]  ;;  %1187 = vset.pattern.permute.xlu1 %v1196_v2  ;;  %1186 = vset.pattern.permute.xlu0 %v1196_v2  ;;  %v305_v6 = vld [vmem:[%s1479_s1 + $0x8] sm:$0xff]  ;;  %v761_v27 = vperm.slane %v1070_v26, 1  ;;  %v760_v28 = vperm.slane %v1070_v26, 0  ;;  %vm351_vm0 = vcmask 138240   ;;  %v1205_v29 = vmov 0.0  }
   0xd   : > { %v1069_v3 = vld [vmem:[%s1483_s5 + $0x7] ss:$8 sm:$0x3]  ;;  %324 = vperm.xlu1 %1187, %v320_v0   ;;  %308 = vperm.xlu0 %1186, %v304_v1   ;;  %v1068_v8 = vld [vmem:[%s1483_s5 + $0x6] ss:$8 sm:$0x3] }
   0xe   : > { %v705_v4 = vperm.slane %v1069_v3, 0  ;;  %v706_v7 = vperm.slane %v1069_v3, 1  ;;  %v1067_v9 = vld [vmem:[%s1483_s5 + $0x5] ss:$8 sm:$0x3]  ;;  %v651_v10 = vperm.slane %v1068_v8, 1 }
   0xf   : > { %v650_v11 = vperm.slane %v1068_v8, 0  ;;  %v595_v12 = vperm.slane %v1067_v9, 0  ;;  %v1066_v13 = vld [vmem:[%s1483_s5 + $0x3] ss:$8 sm:$0x3]  ;;  %v596_v15 = vperm.slane %v1067_v9, 1 }
  0x10   : > { %707 = vrot.lane.b32.xlu2 %v705_v4, %s1197_s9  ;;  %v532_v14 = vperm.slane %v1066_v13, 0  ;;  %v533_v16 = vperm.slane %v1066_v13, 1  ;;  %v1065_v17 = vld [vmem:[%s1483_s5 + $0x2] ss:$8 sm:$0x3]  ;;  %352 = vst.msk [vmem:[#allocation2 + $0x18] sm:$0xff] %vm351_vm0, %v1205_v29 }
  0x11   : > { %v1064_v18 = vld [vmem:[%s1483_s5 + $0x1] ss:$8 sm:$0x3]  ;;  %v478_v19 = vperm.slane %v1065_v17, 1  ;;  %v477_v20 = vperm.slane %v1065_v17, 0  ;;  %353 = vst.msk [vmem:[#allocation2 + $0x38] sm:$0xff] %vm351_vm0, %v1205_v29 }
  0x12   : > { %v422_v21 = vperm.slane %v1064_v18, 0  ;;  %v364_v22 = vld [vmem:[%s1483_s5] ss:$8 sm:$0x3]  ;;  %v423_v24 = vperm.slane %v1064_v18, 1  ;;  %s1487_s25 = smov (!%p284_p3, %s1053_s25), 1 }
  0x13   : > { %v366_v23 = vperm.slane %v364_v22, 0  ;;  %v367_v25 = vperm.slane %v364_v22, 1  ;;  %s1147_s15 = sshll.u32 %s1487_s25, 5  ;;  %vm515_vm5 = vcmask 121856   ;;  %vm570_vm6 = vcmask 7168  }
  0x14   : > { %s288_s19 = scalar_lea.vmem %s1478_s0, %s1147_s15  ;;  %vm460_vm7 = vcmask 130048   ;;  %vm538_vm8 = vcmask 1039360   ;;  %vm483_vm9 = vcmask 924672   ;;  %vm428_vm10 = vcmask 916480  }
  0x15   : > { %329 = vperm.xlu1 %1187, %v321_v5   ;;  %313 = vperm.xlu0 %1186, %v305_v6   ;;  %v300_v38 = vld [vmem:[%s288_s19] sm:$0xff]  ;;  %v301_v39 = vld [vmem:[%s288_s19 + $0x8] sm:$0xff]  ;;  %v302_v48 = vld [vmem:[%s288_s19 + $0x10] sm:$0xff]  ;;  %vm372_vm11 = vcmask 908288   ;;  %vm403_vm12 = vcmask 1043456  }
  0x16   : > { %v303_v49 = vld [vmem:[%s288_s19 + $0x18] sm:$0xff] }
  0x17   : > { %v1310_v31 = vld [vmem:[#allocation2 + $0x18] sm:$0xff] }
  0x18   : > { %709 = vrot.lane.b32.xlu2 %v706_v7, %s1197_s9  ;;  %v1312_v32 = vld [vmem:[#allocation2 + $0x38] sm:$0xff] }
  0x1d   : > { %654 = vrot.lane.b32.xlu1 %v651_v10, %s1198_s18  ;;  %652 = vrot.lane.b32.xlu0 %v650_v11, %s1198_s18 }
  0x20   : > { %597 = vrot.lane.b32.xlu2 %v595_v12, %s1199_s21 }
  0x25   : > { %534 = vrot.lane.b32.xlu1 %v532_v14, %s1200_s22  ;;  %599 = vrot.lane.b32.xlu0 %v596_v15, %s1199_s21 }
  0x28   : > { %536 = vrot.lane.b32.xlu2 %v533_v16, %s1200_s22 }
  0x2d   : > { %481 = vrot.lane.b32.xlu1 %v478_v19, %s1201_s29  ;;  %479 = vrot.lane.b32.xlu0 %v477_v20, %s1201_s29 }
  0x30   : > { %424 = vrot.lane.b32.xlu2 %v422_v21, %s1202_s10 }
  0x35   : > { %368 = vrot.lane.b32.xlu1 %v366_v23, %s1203_s11  ;;  %426 = vrot.lane.b32.xlu0 %v423_v24, %s1202_s10 }
  0x38   : > { %370 = vrot.lane.b32.xlu2 %v367_v25, %s1203_s11 }
  0x3d   : > { %764 = vrot.lane.b32.xlu1 %v761_v27, %s1204_s14  ;;  %762 = vrot.lane.b32.xlu0 %v760_v28, %s1204_s14 }
  0x6a   : > { %v1308_v30 = vpop.permute.xlu2 %707 }
  0x72   : > { %v1316_v33 = vpop.permute.xlu2 %709 }
  0x73   : > { %v718_v34 = vmul.f32 %v1316_v33, %v1310_v31  ;;  %v721_v35 = vmul.f32 %v1316_v33, %v1312_v32  ;;  %v712_v18 = vsel %vm460_vm7, %v1308_v30, %v1316_v33 }
  0x75   : > { %v725_v36 = vpack.c.bf16 %v721_v35, %v721_v35  ;;  %v723_v37 = vpack.c.bf16 %v718_v34, %v718_v34 }
  0x77   : > { %736 = vrot.lane.b32.xlu2 %v725_v36, %s1202_s10  ;;  %732 = vrot.lane.b32.xlu0 %v723_v37, %s1202_s10 }
  0x7a   : > { %v598_v12 = vpop.permute.xlu2 %597 }
  0x7f   : > { %v325_v40 = vpop.permute.xlu1 %324  ;;  %v309_v41 = vpop.permute.xlu0 %308 }
  0x80   : > { %v316_v42 = vmul.f32 %v309_v41, %v300_v38  ;;  %v317_v43 = vmul.f32 %v309_v41, %v301_v39 }
  0x82   : > { %v332_v44 = vadd.f32 %v325_v40, %v316_v42  ;;  %v333_v45 = vadd.f32 %v325_v40, %v317_v43  ;;  %v537_v33 = vpop.permute.xlu2 %536 }
  0x84   : > { %vm336_vm1 = vcmp.ge.f32.partialorder %v332_v44, 0.0  ;;  %vm337_vm2 = vcmp.ge.f32.partialorder %v333_v45, 0.0  ;;  %v340_v46 = vmul.f32 0.2, %v332_v44  ;;  %v341_v47 = vmul.f32 0.2, %v333_v45 }
  0x86   : > { %v1332_v50 = vsel %vm336_vm1, %v332_v44, %v340_v46  ;;  %v1334_v51 = vsel %vm337_vm2, %v333_v45, %v341_v47 }
  0x87   : > { %v330_v52 = vpop.permute.xlu1 %329  ;;  %v314_v53 = vpop.permute.xlu0 %313  ;;  %v582_v56 = vpack.c.bf16 %v1334_v51, %v1332_v50  ;;  %v716_v20 = vmul.f32 %v1308_v30, %v1332_v50  ;;  %v717_v21 = vmul.f32 %v712_v18, %v1334_v51  ;;  %v545_v34 = vmul.f32 %v537_v33, %v1334_v51 }
  0x88   : > { %v318_v54 = vmul.f32 %v314_v53, %v302_v48  ;;  %v319_v55 = vmul.f32 %v314_v53, %v303_v49  ;;  %v606_v41 = vmul.f32 %v598_v12, %v1332_v50 }
  0x89   : > { %584 = vst [vmem:[#allocation3 + $0x40] sm:$0xff] %v582_v56  ;;  %v722_v27 = vpack.c.bf16 %v717_v21, %v716_v20  ;;  %v550_v40 = vpack.c.bf16 %v545_v34, %v545_v34 }
  0x8a   : > { %v334_v57 = vadd.f32 %v330_v52, %v318_v54  ;;  %v335_v58 = vadd.f32 %v330_v52, %v319_v55 }
  0x8c   : > { %vm338_vm3 = vcmp.ge.f32.partialorder %v334_v57, 0.0  ;;  %vm339_vm4 = vcmp.ge.f32.partialorder %v335_v58, 0.0  ;;  %v342_v59 = vmul.f32 0.2, %v334_v57  ;;  %v343_v60 = vmul.f32 0.2, %v335_v58 }
  0x8e   : > { %v1338_v61 = vsel %vm338_vm3, %v334_v57, %v342_v59  ;;  %v1340_v62 = vsel %vm339_vm4, %v335_v58, %v343_v60 }
  0x8f   : > { %v655_v63 = vpop.permute.xlu1 %654  ;;  %v653_v0 = vpop.permute.xlu0 %652  ;;  %v583_v6 = vpack.c.bf16 %v1340_v62, %v1338_v61  ;;  %v719_v24 = vmul.f32 %v1308_v30, %v1338_v61  ;;  %v720_v25 = vmul.f32 %v712_v18, %v1340_v62  ;;  %v609_v26 = vmul.f32 %v598_v12, %v1338_v61 }
  0x90   : > { %v663_v1 = vmul.f32 %v1310_v31, %v655_v63  ;;  %v666_v2 = vmul.f32 %v1312_v32, %v655_v63  ;;  %v657_v5 = vsel %vm515_vm5, %v653_v0, %v655_v63  ;;  %v661_v7 = vmul.f32 %v653_v0, %v1332_v50 }
  0x91   : > { %585 = vst [vmem:[#allocation3 + $0x48] sm:$0xff] %v583_v6  ;;  %v662_v8 = vmul.f32 %v657_v5, %v1334_v51  ;;  %v724_v29 = vpack.c.bf16 %v720_v25, %v719_v24  ;;  %v664_v35 = vmul.f32 %v653_v0, %v1338_v61  ;;  %v665_v36 = vmul.f32 %v657_v5, %v1340_v62  ;;  %v425_v5 = vpop.permute.xlu2 %424 }
  0x92   : > { %v668_v3 = vpack.c.bf16 %v663_v1, %v663_v1  ;;  %v670_v4 = vpack.c.bf16 %v666_v2, %v666_v2 }
  0x93   : > { %v667_v15 = vpack.c.bf16 %v662_v8, %v661_v7  ;;  %v669_v39 = vpack.c.bf16 %v665_v36, %v664_v35 }
  0x94   : > { %677 = vrot.lane.b32.xlu1 %v668_v3, %s1201_s29  ;;  %681 = vrot.lane.b32.xlu0 %v670_v4, %s1201_s29  ;;  %v548_v3 = vmul.f32 %v537_v33, %v1340_v62 }
  0x96   : > { %v552_v6 = vpack.c.bf16 %v548_v3, %v548_v3 }
  0x97   : > { %v535_v9 = vpop.permute.xlu1 %534  ;;  %v600_v10 = vpop.permute.xlu0 %599 }
  0x98   : > { %v608_v11 = vmul.f32 %v1310_v31, %v600_v10  ;;  %v611_v13 = vmul.f32 %v1312_v32, %v600_v10  ;;  %v602_v16 = vsel %vm570_vm6, %v598_v12, %v600_v10  ;;  %v539_v42 = vsel %vm538_vm8, %v535_v9, %v537_v33 }
  0x99   : > { %v610_v19 = vmul.f32 %v602_v16, %v1340_v62  ;;  %v607_v38 = vmul.f32 %v602_v16, %v1334_v51  ;;  %v543_v45 = vmul.f32 0.0, %v535_v9  ;;  %v544_v46 = vmul.f32 %v539_v42, %v1332_v50  ;;  %v371_v16 = vpop.permute.xlu2 %370 }
  0x9a   : > { %v613_v14 = vpack.c.bf16 %v608_v11, %v608_v11  ;;  %v615_v17 = vpack.c.bf16 %v611_v13, %v611_v13  ;;  %v547_v53 = vmul.f32 %v539_v42, %v1338_v61  ;;  %v433_v10 = vmul.f32 0.0, %v425_v5 }
  0x9b   : > { %v614_v28 = vpack.c.bf16 %v610_v19, %v609_v26  ;;  %v612_v44 = vpack.c.bf16 %v607_v38, %v606_v41  ;;  %v549_v59 = vpack.c.bf16 %v544_v46, %v543_v45  ;;  %v379_v18 = vmul.f32 %v371_v16, %v1334_v51 }
  0x9c   : > { %622 = vrot.lane.b32.xlu2 %v613_v14, %s1200_s22  ;;  %675 = vrot.lane.b32.xlu0 %v667_v15, %s1201_s29  ;;  %v551_v1 = vpack.c.bf16 %v547_v53, %v543_v45 }
  0x9d   : > { %626 = vrot.lane.b32.xlu1 %v615_v17, %s1200_s22 }
  0x9f   : > { %v482_v22 = vpop.permute.xlu1 %481  ;;  %v480_v23 = vpop.permute.xlu0 %479 }
  0xa0   : > { %v484_v43 = vsel %vm483_vm9, %v480_v23, %v482_v22  ;;  %v488_v47 = vmul.f32 0.0, %v480_v23  ;;  %v493_v2 = vmul.f32 %v482_v22, %v1340_v62  ;;  %v490_v4 = vmul.f32 %v482_v22, %v1334_v51 }
  0xa1   : > { %v489_v48 = vmul.f32 %v484_v43, %v1332_v50  ;;  %v492_v11 = vmul.f32 %v484_v43, %v1338_v61  ;;  %v384_v22 = vpack.c.bf16 %v379_v18, %v379_v18 }
  0xa2   : > { %v497_v7 = vpack.c.bf16 %v493_v2, %v493_v2  ;;  %v495_v9 = vpack.c.bf16 %v490_v4, %v490_v4 }
  0xa3   : > { %v494_v60 = vpack.c.bf16 %v489_v48, %v488_v47  ;;  %v496_v14 = vpack.c.bf16 %v492_v11, %v488_v47 }
  0xa4   : > { %730 = vrot.lane.b32.xlu2 %v722_v27, %s1202_s10  ;;  %624 = vrot.lane.b32.xlu0 %v614_v28, %s1200_s22 }
  0xa5   : > { %734 = vrot.lane.b32.xlu1 %v724_v29, %s1202_s10  ;;  %v382_v29 = vmul.f32 %v371_v16, %v1340_v62 }
  0xa7   : > { %v1374_v30 = vpop.permute.xlu1 %368  ;;  %v427_v37 = vpop.permute.xlu0 %426 }
  0xa8   : > { %v429_v8 = vsel %vm428_vm10, %v425_v5, %v427_v37  ;;  %v435_v19 = vmul.f32 %v427_v37, %v1334_v51  ;;  %v438_v20 = vmul.f32 %v427_v37, %v1340_v62  ;;  %v373_v23 = vsel %vm372_vm11, %v1374_v30, %v371_v16 }
  0xa9   : > { %v437_v12 = vmul.f32 %v429_v8, %v1338_v61  ;;  %v434_v13 = vmul.f32 %v429_v8, %v1332_v50  ;;  %v377_v25 = vmul.f32 0.0, %v1374_v30  ;;  %v378_v26 = vmul.f32 %v373_v23, %v1332_v50 }
  0xaa   : > { %v440_v21 = vpack.c.bf16 %v435_v19, %v435_v19  ;;  %v442_v24 = vpack.c.bf16 %v438_v20, %v438_v20 }
  0xab   : > { %v441_v15 = vpack.c.bf16 %v437_v12, %v433_v10  ;;  %v439_v17 = vpack.c.bf16 %v434_v13, %v433_v10  ;;  %v383_v27 = vpack.c.bf16 %v378_v26, %v377_v25 }
  0xac   : > { %679 = vrot.lane.b32.xlu2 %v669_v39, %s1201_s29  ;;  %559 = vrot.lane.b32.xlu0 %v550_v40, %s1199_s21 }
  0xad   : > { %620 = vrot.lane.b32.xlu1 %v612_v44, %s1200_s22  ;;  %s1148_s22 = sshll.u32 %s1487_s25, 4 }
  0xae   : > { %s293_s27 = scalar_lea.vmem %s1484_s6, %s1148_s22  ;;  %s298_s30 = scalar_lea.vmem %s1485_s7, %s1148_s22 }
  0xaf   : > { %v765_v49 = vpop.permute.xlu1 %764  ;;  %v763_v52 = vpop.permute.xlu0 %762 }
  0xb0   : > { %v766_v54 = vsel %vm351_vm0, %v763_v52, %v765_v49  ;;  %v770_v55 = vmul.f32 %v763_v52, %v1332_v50  ;;  %v773_v57 = vmul.f32 %v763_v52, %v1338_v61  ;;  %v775_v33 = vmul.f32 %v765_v49, %v1312_v32 }
  0xb1   : > { %v771_v56 = vmul.f32 %v766_v54, %v1334_v51  ;;  %v774_v58 = vmul.f32 %v766_v54, %v1340_v62  ;;  %v381_v51 = vmul.f32 %v373_v23, %v1338_v61  ;;  %v772_v34 = vmul.f32 %v765_v49, %v1310_v31  ;;  %v823_v61 = vld [vmem:[%s1482_s4] sm:$0xff] }
  0xb2   : > { %v779_v35 = vpack.c.bf16 %v775_v33, %v775_v33  ;;  %v386_v50 = vpack.c.bf16 %v382_v29, %v382_v29 }
  0xb3   : > { %v776_v63 = vpack.c.bf16 %v771_v56, %v770_v55  ;;  %v778_v0 = vpack.c.bf16 %v774_v58, %v773_v57  ;;  %v385_v28 = vpack.c.bf16 %v381_v51, %v377_v25  ;;  %v777_v36 = vpack.c.bf16 %v772_v34, %v772_v34 }
  0xb4   : > { %557 = vrot.lane.b32.xlu2 %v549_v59, %s1199_s21  ;;  %502 = vrot.lane.b32.xlu0 %v494_v60, %s1198_s18 }
  0xb5   : > { %561 = vrot.lane.b32.xlu1 %v551_v1, %s1199_s21 }
  0xbc   : > { %563 = vrot.lane.b32.xlu2 %v552_v6, %s1199_s21  ;;  %508 = vrot.lane.b32.xlu0 %v497_v7, %s1198_s18 }
  0xbd   : > { %504 = vrot.lane.b32.xlu1 %v495_v9, %s1198_s18 }
  0xc4   : > { %506 = vrot.lane.b32.xlu2 %v496_v14, %s1198_s18  ;;  %451 = vrot.lane.b32.xlu0 %v441_v15, %s1197_s9 }
  0xc5   : > { %447 = vrot.lane.b32.xlu1 %v439_v17, %s1197_s9 }
  0xcc   : > { %449 = vrot.lane.b32.xlu2 %v440_v21, %s1197_s9  ;;  %393 = vrot.lane.b32.xlu0 %v384_v22, %s1204_s14 }
  0xcd   : > { %453 = vrot.lane.b32.xlu1 %v442_v24, %s1197_s9 }
  0xd1   : > { %v737_v32 = vpop.permute.xlu2 %736 }
  0xd4   : > { %784 = vrot.lane.b32.xlu0 %v776_v63, %s1203_s11  ;;  %391 = vrot.lane.b32.xlu2 %v383_v27, %s1204_s14  ;;  %v741_v63 = vrot.slane %v737_v32, 4 }
  0xd5   : > { %395 = vrot.lane.b32.xlu1 %v385_v28, %s1204_s14 }
  0xdc   : > { %790 = vrot.lane.b32.xlu0 %v779_v35, %s1203_s11  ;;  %397 = vrot.lane.b32.xlu2 %v386_v50, %s1204_s14 }
  0xdd   : > { %786 = vrot.lane.b32.xlu1 %v777_v36, %s1203_s11 }
  0xe4   : > { %788 = vrot.lane.b32.xlu2 %v778_v0, %s1203_s11 }
  0xe5   : > { %826 = vperm.xlu1 %1187, %v823_v61  }
  0xe9   : > { %v733_v30 = vpop.permute.xlu0 %732 }
  0xea   : > { %v739_v31 = vrot.slane %v733_v30, 4 }
  0xf6   : > { %v623_v62 = vpop.permute.xlu2 %622 }
  0xf7   : > { %v629_v10 = vrot.slane %v623_v62, 4 }
  0xfe   : > { %v731_v37 = vpop.permute.xlu2 %730 }
  0xff   : > { %v738_v38 = vrot.slane %v731_v37, 4 }
 0x101   : > { %v742_v39 = vsel %vm403_vm12, %v738_v38, %v739_v31 }
 0x102   : > { %v744_v40 = vsel %vm428_vm10, %v731_v37, %v742_v39  ;;  %v1159_v37 = vld [vmem:[#allocation3 + $0x44] sm:$0xf0] }
 0x103   : > { %749 = vst [vmem:[#allocation3 + $0x70] sm:$0xff] %v744_v40  ;;  %v1107_v40 = vld [vmem:[#allocation3 + $0x48] sm:$0xf0] }
 0x106   : > { %v678_v41 = vpop.permute.xlu1 %677  ;;  %v682_v42 = vpop.permute.xlu0 %681 }
 0x107   : > { %v686_v43 = vrot.slane %v682_v42, 4  ;;  %v680_v44 = vpop.permute.xlu2 %679  ;;  %v684_v49 = vrot.slane %v678_v41, 4 }
 0x108   : > { %v685_v45 = vrot.slane %v680_v44, 4 }
 0x10a   : > { %v690_v46 = vsel %vm403_vm12, %v685_v45, %v686_v43  ;;  %v1129_v15 = vld [vmem:[#allocation3 + $0x70] sm:$0xf]  ;;  %v1164_v19 = vld [vmem:[#allocation3 + $0x74] sm:$0xf]  ;;  %v1105_v43 = vld [vmem:[#allocation3 + $0x40] sm:$0xf] }
 0x10b   : > { %v691_v47 = vsel %vm483_vm9, %v680_v44, %v690_v46  ;;  %v1106_v45 = vor.u32 %v1159_v37, %v1105_v43  ;;  %v1158_v46 = vld [vmem:[#allocation3 + $0x44] sm:$0xf] }
 0x10c   : > { %695 = vst [vmem:[#allocation3 + $0x68] sm:$0xff] %v691_v47 }
 0x10e   : > { %v676_v48 = vpop.permute.xlu0 %675 }
 0x10f   : > { %v683_v52 = vrot.slane %v676_v48, 4  ;;  %v627_v53 = vpop.permute.xlu1 %626  ;;  %v558_v54 = vpop.permute.xlu2 %557 }
 0x110   : > { %v631_v58 = vrot.slane %v627_v53, 4  ;;  %v565_v7 = vrot.slane %v558_v54, 4 }
 0x111   : > { %v687_v55 = vsel %vm403_vm12, %v683_v52, %v684_v49  ;;  %v1110_v52 = vor.u32 %v1158_v46, %v1107_v40 }
 0x112   : > { %v689_v56 = vsel %vm483_vm9, %v676_v48, %v687_v55 }
 0x113   : > { %694 = vst [vmem:[#allocation3 + $0x60] sm:$0xff] %v689_v56  ;;  %v1163_v51 = vld [vmem:[#allocation3 + $0x64] sm:$0xf0]  ;;  %v1123_v27 = vld [vmem:[#allocation3 + $0x68] sm:$0xf0] }
 0x116   : > { %v625_v57 = vpop.permute.xlu0 %624 }
 0x117   : > { %v630_v59 = vrot.slane %v625_v57, 4  ;;  %v735_v60 = vpop.permute.xlu1 %734  ;;  %v564_v3 = vpop.permute.xlu2 %563 }
 0x118   : > { %v740_v0 = vrot.slane %v735_v60, 4  ;;  %v568_v28 = vrot.slane %v564_v3, 4 }
 0x119   : > { %v635_v1 = vsel %vm403_vm12, %v630_v59, %v631_v58 }
 0x11a   : > { %v636_v2 = vsel %vm538_vm8, %v625_v57, %v635_v1  ;;  %v745_v4 = vsel %vm403_vm12, %v740_v0, %v741_v63  ;;  %v1121_v24 = vld [vmem:[#allocation3 + $0x60] sm:$0xf]  ;;  %v1162_v25 = vld [vmem:[#allocation3 + $0x64] sm:$0xf] }
 0x11b   : > { %640 = vst [vmem:[#allocation3 + $0x58] sm:$0xff] %v636_v2  ;;  %v746_v5 = vsel %vm428_vm10, %v735_v60, %v745_v4  ;;  %v1122_v33 = vor.u32 %v1163_v51, %v1121_v24  ;;  %v1126_v34 = vor.u32 %v1162_v25, %v1123_v27 }
 0x11c   : > { %750 = vst [vmem:[#allocation3 + $0x78] sm:$0xff] %v746_v5 }
 0x11e   : > { %v560_v6 = vpop.permute.xlu0 %559 }
 0x11f   : > { %v566_v8 = vrot.slane %v560_v6, 4  ;;  %v621_v9 = vpop.permute.xlu1 %620  ;;  %v507_v17 = vpop.permute.xlu2 %506 }
 0x120   : > { %v628_v12 = vrot.slane %v621_v9, 4  ;;  %v512_v41 = vrot.slane %v507_v17, 4 }
 0x121   : > { %v569_v11 = vsel %vm403_vm12, %v565_v7, %v566_v8 }
 0x122   : > { %v571_v13 = vsel %vm570_vm6, %v558_v54, %v569_v11  ;;  %v632_v14 = vsel %vm403_vm12, %v628_v12, %v629_v10  ;;  %v1161_v50 = vld [vmem:[#allocation3 + $0x54] sm:$0xf0]  ;;  %v1115_v62 = vld [vmem:[#allocation3 + $0x58] sm:$0xf0] }
 0x123   : > { %576 = vst [vmem:[#allocation3 + $0x30] sm:$0xff] %v571_v13  ;;  %v634_v16 = vsel %vm538_vm8, %v621_v9, %v632_v14  ;;  %v1165_v18 = vld [vmem:[#allocation3 + $0x74] sm:$0xf0]  ;;  %v1131_v20 = vld [vmem:[#allocation3 + $0x78] sm:$0xf0] }
 0x124   : > { %639 = vst [vmem:[#allocation3 + $0x50] sm:$0xff] %v634_v16  ;;  %v1130_v21 = vor.u32 %v1165_v18, %v1129_v15  ;;  %v1134_v22 = vor.u32 %v1164_v19, %v1131_v20 }
 0x126   : > { %v503_v23 = vpop.permute.xlu0 %502  ;;  %928 = vmatpush.bf16.msra.mxu0 %v1130_v21  ;;  %954 = vmatpush.bf16.msra.mxu2 %v1134_v22 }
 0x127   : > { %v562_v26 = vpop.permute.xlu1 %561  ;;  %v450_v38 = vpop.permute.xlu2 %449  ;;  %v510_v47 = vrot.slane %v503_v23, 4 }
 0x128   : > { %v567_v29 = vrot.slane %v562_v26, 4  ;;  %v456_v3 = vrot.slane %v450_v38, 4 }
 0x12a   : > { %v572_v35 = vsel %vm403_vm12, %v567_v29, %v568_v28  ;;  %929 = vmatpush.bf16.msra.mxu0 %v1122_v33  ;;  %955 = vmatpush.bf16.msra.mxu2 %v1126_v34  ;;  %v1097_v55 = vld [vmem:[#allocation3 + $0x30] sm:$0xf]  ;;  %v1156_v58 = vld [vmem:[#allocation3 + $0x34] sm:$0xf] }
 0x12b   : > { %v573_v36 = vsel %vm570_vm6, %v562_v26, %v572_v35  ;;  %v1113_v61 = vld [vmem:[#allocation3 + $0x50] sm:$0xf]  ;;  %v1160_v32 = vld [vmem:[#allocation3 + $0x54] sm:$0xf] }
 0x12c   : > { %577 = vst [vmem:[#allocation3 + $0x38] sm:$0xff] %v573_v36  ;;  %v1114_v30 = vor.u32 %v1161_v50, %v1113_v61  ;;  %v1118_v31 = vor.u32 %v1160_v32, %v1115_v62 }
 0x12e   : > { %v509_v39 = vpop.permute.xlu0 %508  ;;  %930 = vmatpush.bf16.msra.mxu0 %v1114_v30  ;;  %956 = vmatpush.bf16.msra.mxu2 %v1118_v31  ;;  %v348_v31 = vld [vmem:[%s1481_s3] sm:$0xff] }
 0x12f   : > { %v513_v42 = vrot.slane %v509_v39, 4  ;;  %v505_v44 = vpop.permute.xlu1 %504  ;;  %v392_v1 = vpop.permute.xlu2 %391 }
 0x130   : > { %v511_v48 = vrot.slane %v505_v44, 4  ;;  %v399_v14 = vrot.slane %v392_v1, 4 }
 0x131   : > { %v517_v49 = vsel %vm403_vm12, %v512_v41, %v513_v42  ;;  %v830_v42 = vunpack.c.l.b16 %v348_v31 }
 0x132   : > { %v518_v53 = vsel %vm515_vm5, %v507_v17, %v517_v49  ;;  %v514_v54 = vsel %vm403_vm12, %v510_v47, %v511_v48  ;;  %931 = vmatpush.bf16.msra.mxu0 %v1106_v45  ;;  %957 = vmatpush.bf16.msra.mxu2 %v1110_v52 }
 0x133   : > { %522 = vst [vmem:[#allocation3 + $0x28] sm:$0xff] %v518_v53  ;;  %v516_v56 = vsel %vm515_vm5, %v503_v23, %v514_v54  ;;  %v1157_v57 = vld [vmem:[#allocation3 + $0x34] sm:$0xf0]  ;;  %v1099_v59 = vld [vmem:[#allocation3 + $0x38] sm:$0xf0]  ;;  %v832_v53 = vpack.c.b16 %v830_v42, %v830_v42  ;;  %v831_v54 = vunpack.c.h.b16 %v348_v31 }
 0x134   : > { %521 = vst [vmem:[#allocation3 + $0x20] sm:$0xff] %v516_v56  ;;  %v1098_v60 = vor.u32 %v1157_v57, %v1097_v55  ;;  %v1102_v63 = vor.u32 %v1156_v58, %v1099_v59 }
 0x136   : > { %v452_v0 = vpop.permute.xlu0 %451  ;;  %932 = vmatpush.bf16.msra.mxu0 %v1098_v60  ;;  %958 = vmatpush.bf16.msra.mxu2 %v1102_v63  ;;  %v833_v63 = vpack.c.b16 %v831_v54, %v831_v54 }
 0x137   : > { %v448_v2 = vpop.permute.xlu1 %447  ;;  %v457_v17 = vrot.slane %v452_v0, 4  ;;  %v398_v20 = vpop.permute.xlu2 %397 }
 0x138   : > { %v455_v4 = vrot.slane %v448_v2, 4  ;;  %v402_v26 = vrot.slane %v398_v20, 4 }
 0x13a   : > { %v1155_v5 = vld [vmem:[#allocation3 + $0x24] sm:$0xf0]  ;;  %v1091_v6 = vld [vmem:[#allocation3 + $0x28] sm:$0xf0]  ;;  %v459_v7 = vsel %vm403_vm12, %v455_v4, %v456_v3 }
 0x13b   : > { %v461_v8 = vsel %vm460_vm7, %v448_v2, %v459_v7  ;;  %v1089_v9 = vld [vmem:[#allocation3 + $0x20] sm:$0xf]  ;;  %v1154_v10 = vld [vmem:[#allocation3 + $0x24] sm:$0xf] }
 0x13c   : > { %466 = vst [vmem:[#allocation3 + $0x10] sm:$0xff] %v461_v8  ;;  %v1090_v11 = vor.u32 %v1155_v5, %v1089_v9  ;;  %v1094_v12 = vor.u32 %v1154_v10, %v1091_v6  ;;  %v980_v5 = vld [vmem:[%s293_s27] sm:$0xff] }
 0x13e   : > { %v394_v13 = vpop.permute.xlu0 %393  ;;  %933 = vmatpush.bf16.msra.mxu0 %v1090_v11  ;;  %959 = vmatpush.bf16.msra.mxu2 %v1094_v12  ;;  %v981_v12 = vld [vmem:[%s293_s27 + $0x8] sm:$0xff] }
 0x13f   : > { %v400_v15 = vrot.slane %v394_v13, 4  ;;  %v454_v16 = vpop.permute.xlu1 %453  ;;  %v789_v29 = vpop.permute.xlu2 %788 }
 0x140   : > { %v458_v19 = vrot.slane %v454_v16, 4  ;;  %v794_v62 = vrot.slane %v789_v29, 4 }
 0x141   : > { %v404_v18 = vsel %vm403_vm12, %v399_v14, %v400_v15 }
 0x142   : > { %v406_v21 = vsel %vm351_vm0, %v392_v1, %v404_v18  ;;  %v462_v22 = vsel %vm403_vm12, %v457_v17, %v458_v19 }
 0x143   : > { %411 = vst [vmem:[#allocation3] sm:$0xff] %v406_v21  ;;  %v463_v23 = vsel %vm460_vm7, %v452_v0, %v462_v22  ;;  %v1081_v28 = vld [vmem:[#allocation3 + $0x10] sm:$0xf]  ;;  %v1152_v35 = vld [vmem:[#allocation3 + $0x14] sm:$0xf] }
 0x144   : > { %467 = vst [vmem:[#allocation3 + $0x18] sm:$0xff] %v463_v23 }
 0x146   : > { %v785_v24 = vpop.permute.xlu0 %784 }
 0x147   : > { %v396_v25 = vpop.permute.xlu1 %395  ;;  %v792_v38 = vrot.slane %v785_v24, 4 }
 0x148   : > { %v401_v51 = vrot.slane %v396_v25, 4 }
 0x14a   : > { %v407_v27 = vsel %vm403_vm12, %v401_v51, %v402_v26  ;;  %v1073_v44 = vld [vmem:[#allocation3] sm:$0xf]  ;;  %v1150_v47 = vld [vmem:[#allocation3 + $0x4] sm:$0xf] }
 0x14b   : > { %v408_v33 = vsel %vm351_vm0, %v396_v25, %v407_v27  ;;  %v1153_v34 = vld [vmem:[#allocation3 + $0x14] sm:$0xf0]  ;;  %v1083_v50 = vld [vmem:[#allocation3 + $0x18] sm:$0xf0] }
 0x14c   : > { %412 = vst [vmem:[#allocation3 + $0x8] sm:$0xff] %v408_v33  ;;  %v1082_v36 = vor.u32 %v1153_v34, %v1081_v28  ;;  %v1086_v61 = vor.u32 %v1152_v35, %v1083_v50 }
 0x14e   : > { %v791_v32 = vpop.permute.xlu0 %790  ;;  %934 = vmatpush.bf16.msra.mxu0 %v1082_v36  ;;  %960 = vmatpush.bf16.msra.mxu2 %v1086_v61 }
 0x14f   : > { %v795_v30 = vrot.slane %v791_v32, 4  ;;  %v787_v37 = vpop.permute.xlu1 %786 }
 0x150   : > { %v793_v40 = vrot.slane %v787_v37, 4 }
 0x151   : > { %v799_v39 = vsel %vm403_vm12, %v794_v62, %v795_v30 }
 0x152   : > { %v800_v41 = vsel %vm372_vm11, %v789_v29, %v799_v39  ;;  %v796_v43 = vsel %vm403_vm12, %v792_v38, %v793_v40 }
 0x153   : > { %804 = vst [vmem:[#allocation3 + $0x88] sm:$0xff] %v800_v41  ;;  %v798_v45 = vsel %vm372_vm11, %v785_v24, %v796_v43  ;;  %v1151_v46 = vld [vmem:[#allocation3 + $0x4] sm:$0xf0]  ;;  %v1075_v48 = vld [vmem:[#allocation3 + $0x8] sm:$0xf0] }
 0x154   : > { %803 = vst [vmem:[#allocation3 + $0x80] sm:$0xff] %v798_v45  ;;  %v1074_v49 = vor.u32 %v1151_v46, %v1073_v44  ;;  %v1078_v52 = vor.u32 %v1150_v47, %v1075_v48 }
 0x156   : > { %935 = vmatpush.bf16.msra.mxu0 %v1074_v49  ;;  %961 = vmatpush.bf16.msra.mxu2 %v1078_v52 }
 0x157   : > { %v827_v1 = vpop.permute.xlu1 %826 }
 0x159   : > { %936 = vmatmul.bf16.vlgmr.msra.gmra.mxu0 %v832_v53  ;;  %962 = vmatmul.bf16.vlgmr.msra.gmra.mxu2 %v832_v53 }
 0x15a   : > { %v1167_v55 = vld [vmem:[#allocation3 + $0x84] sm:$0xf0]  ;;  %v1139_v56 = vld [vmem:[#allocation3 + $0x88] sm:$0xf0] }
 0x15b   : > { %v1137_v57 = vld [vmem:[#allocation3 + $0x80] sm:$0xf]  ;;  %v1166_v58 = vld [vmem:[#allocation3 + $0x84] sm:$0xf] }
 0x15c   : > { %v1138_v59 = vor.u32 %v1167_v55, %v1137_v57  ;;  %v1142_v60 = vor.u32 %v1166_v58, %v1139_v56 }
 0x15e   : > { %948 = vmatpush.bf16.msra.mxu1 %v1138_v59  ;;  %974 = vmatpush.bf16.msra.mxu3 %v1142_v60 }
 0x161   : > { %1143 = vmatmul.msk.bf16.vlgmr.msra.gmra.mxu1 %vm460_vm7, %v833_v63  ;;  %1144 = vmatmul.msk.bf16.vlgmr.msra.gmra.mxu3 %vm460_vm7, %v833_v63 }
 0x1d6   : > { %v937_v0 = vpop.f32.mrf.mxu0 }
 0x1d7   : > { %v938_v3 = vadd.f32 %v937_v0, %v827_v1 }
 0x1dc   : > { %v963_v2 = vpop.f32.mrf.mxu2 }
 0x1dd   : > { %v964_v9 = vadd.f32 %v963_v2, %v827_v1 }
 0x1de   : > { %v950_v4 = vpop.f32.mrf.mxu1  ;;  %v939_v6 = vpop.f32.mrf.mxu0 }
 0x1df   : > { %v951_v7 = vadd.f32 %v950_v4, %v938_v3 }
 0x1e1   : > { %v982_v8 = vadd.f32 %v980_v5, %v951_v7 }
 0x1e3   : > { %984 = vst [vmem:[%s298_s30] sm:$0xff] %v982_v8 }
 0x1e4   : > { %v965_v10 = vpop.f32.mrf.mxu2  ;;  %v976_v11 = vpop.f32.mrf.mxu3 }
 0x1e5   : > { %v977_v13 = vadd.f32 %v976_v11, %v964_v9 }
 0x1e6   : > { %v952_v14 = vpop.f32.mrf.mxu1 }
 0x1e7   : > { %v983_v15 = vadd.f32 %v981_v12, %v977_v13 }
 0x1e9   : > { %985 = vst [vmem:[%s298_s30 + $0x8] sm:$0xff] %v983_v15 }
 0x1ec   : > { %v978_v16 = vpop.f32.mrf.mxu3 }
 0x1ed PF: > { %s17_s24 = sadd.s32 1, %s1194_s24  }
 0x1ee   : > { %p14_p4 = scmp.ge.s32.totalorder %s17_s24, 4  }
 0x1f0   :  { %16 = sbr.rel (!%p14_p4) target bundleno = 1 (0x1), region = 88 }

// kernel: residual_block_forward.11
= control target key start
LH: loop header
LB: loop body
LE: loop exit
PB: predicated region body
PF: predicated region fallthrough
CT: control target
= control target key end

     0   :  { %vm66_vm0 = vcmask 72704   ;;  %v518_v0 = vmov 0   ;;  %v519_v3 = vmov 0.0   ;;  %s520_s30 = smov 8   ;;  %s521_s14 = smov 7   ;;  %vm256_vm3 = vcmask 990208   ;;  %s668_s2 = inlined_call_operand.vmem [shape: f32[16,1], index: 2, kind: input, shape index: {}]   ;;  %s669_s1 = inlined_call_operand.vmem [shape: f32[16,1], index: 1, kind: input, shape index: {}]   ;;  %s670_s5 = inlined_call_operand.vmem [shape: f32[9,128], index: 5, kind: input, shape index: {}]   ;;  %s671_s0 = inlined_call_operand.vmem [shape: f32[1,16,128], index: 0, kind: input, shape index: {}]   ;;  %s672_s4 = inlined_call_operand.vmem [shape: f32[8,1], index: 4, kind: input, shape index: {}]   ;;  %s673_s3 = inlined_call_operand.vmem [shape: bf16[8,144], index: 3, kind: input, shape index: {}]   ;;  %s674_s6 = inlined_call_operand.vmem [shape: f32[1,8,128], index: 6, kind: input, shape index: {}]   ;;  %s675_s7 = inlined_call_operand.vmem [shape: f32[1,8,128], index: 7, kind: output, shape index: {}]  }
   0x1   :  { %509 = vset.pattern.permute.xlu1 %v518_v0  ;;  %508 = vset.pattern.permute.xlu0 %v518_v0  ;;  %v43_v1 = vld [vmem:[%s668_s2] sm:$0xff]  ;;  %67 = vst.msk [vmem:[#allocation2 + $0x10] sm:$0xff] %vm66_vm0, %v519_v3  ;;  %v44_v5 = vld [vmem:[%s668_s2 + $0x8] sm:$0xff]  ;;  %s522_s19 = smov 127   ;;  %s523_s20 = smov 1   ;;  %vm225_vm4 = vcmask 1039360  }
   0x2   :  { %v29_v2 = vld [vmem:[%s669_s1] sm:$0xff]  ;;  %47 = vperm.xlu1 %509, %v43_v1   ;;  %v30_v6 = vld [vmem:[%s669_s1 + $0x8] sm:$0xff]  ;;  %68 = vst.msk [vmem:[#allocation2 + $0x28] sm:$0xff] %vm66_vm0, %v519_v3  ;;  %s524_s21 = smov 121   ;;  %s525_s28 = smov 119   ;;  %vm157_vm5 = vcmask 56320  }
   0x3   :  { %33 = vperm.xlu0 %508, %v29_v2   ;;  %v510_v4 = vld [vmem:[%s670_s5 + $0x7] ss:$0 sm:$0xff]  ;;  %v513_v7 = vld [vmem:[%s670_s5 + $0x6] ss:$0 sm:$0xff]  ;;  %v511_v8 = vld [vmem:[%s670_s5 + $0x3] ss:$0 sm:$0xff] }
   0x4   :  { %270 = vrot.lane.b32.xlu2 %v510_v4, %s520_s30  ;;  %v512_v9 = vld [vmem:[%s670_s5 + $0x5] ss:$0 sm:$0xff]  ;;  %v516_v10 = vld [vmem:[%s670_s5 + $0x2] ss:$0 sm:$0xff]  ;;  %v514_v11 = vld [vmem:[%s670_s5] ss:$0 sm:$0xff] }
   0x5   :  { %v515_v12 = vld [vmem:[%s670_s5 + $0x1] ss:$0 sm:$0xff]  ;;  %v517_v13 = vld [vmem:[%s670_s5 + $0x8] ss:$0 sm:$0xff]  ;;  %s526_s29 = smov 120   ;;  %s527_s8 = smov 9  }
   0x6   :  { %v27_v15 = vld [vmem:[%s671_s0] sm:$0xff]  ;;  %v28_v25 = vld [vmem:[%s671_s0 + $0x8] sm:$0xff]  ;;  %vm287_vm6 = vcmask 982016   ;;  %vm126_vm7 = vcmask 64512   ;;  %vm318_vm8 = vcmask 973824   ;;  %vm188_vm9 = vcmask 7168  }
   0x7   :  { %vm409_vm10 = vcmask 130048  }
   0x8   :  { %v617_v19 = vld [vmem:[#allocation2 + $0x10] sm:$0xff] }
   0x9   :  { %v266_v35 = vld [vmem:[#allocation2 + $0x28] sm:$0xff] }
   0xa   :  { %52 = vperm.xlu1 %509, %v44_v5  }
   0xb   :  { %38 = vperm.xlu0 %508, %v30_v6  }
   0xc   :  { %239 = vrot.lane.b32.xlu2 %v513_v7, %s521_s14 }
  0x12   :  { %171 = vrot.lane.b32.xlu1 %v511_v8, %s522_s19 }
  0x13   :  { %208 = vrot.lane.b32.xlu0 %v512_v9, %s523_s20 }
  0x14   :  { %140 = vrot.lane.b32.xlu2 %v516_v10, %s524_s21 }
  0x1a   :  { %78 = vrot.lane.b32.xlu1 %v514_v11, %s525_s28 }
  0x1b   :  { %109 = vrot.lane.b32.xlu0 %v515_v12, %s526_s29 }
  0x1c   :  { %301 = vrot.lane.b32.xlu2 %v517_v13, %s527_s8 }
  0x5e   :  { %v271_v14 = vpop.permute.xlu2 %270 }
  0x5f   :  { %v274_v23 = vmul.f32 %v271_v14, %v617_v19  ;;  %v276_v39 = vmul.f32 %v271_v14, %v266_v35 }
  0x66   :  { %v240_v21 = vpop.permute.xlu2 %239 }
  0x67   :  { %v243_v24 = vmul.f32 %v617_v19, %v240_v21  ;;  %v245_v37 = vmul.f32 %v266_v35, %v240_v21 }
  0x6e   :  { %v141_v52 = vpop.permute.xlu2 %140 }
  0x6f   :  { %v143_v55 = vmul.f32 0.0, %v141_v52 }
  0x74   :  { %v48_v16 = vpop.permute.xlu1 %47 }
  0x75   :  { %v34_v17 = vpop.permute.xlu0 %33 }
  0x76   :  { %v41_v18 = vmul.f32 %v34_v17, %v27_v15  ;;  %v302_v5 = vpop.permute.xlu2 %301 }
  0x77   :  { %v305_v10 = vmul.f32 %v302_v5, %v617_v19 }
  0x78   :  { %v55_v20 = vadd.f32 %v48_v16, %v41_v18  ;;  %v307_v16 = vmul.f32 %v302_v5, %v266_v35 }
  0x7a   :  { %vm57_vm1 = vcmp.ge.f32.partialorder %v55_v20, 0.0  ;;  %v59_v22 = vmul.f32 0.2, %v55_v20 }
  0x7c   :  { %v61_v26 = vsel %vm57_vm1, %v55_v20, %v59_v22  ;;  %v53_v31 = vpop.permute.xlu1 %52 }
  0x7d   :  { %v39_v27 = vpop.permute.xlu0 %38  ;;  %v273_v28 = vmul.f32 %v271_v14, %v61_v26  ;;  %v242_v29 = vmul.f32 %v240_v21, %v61_v26  ;;  %v144_v56 = vmul.f32 %v141_v52, %v61_v26  ;;  %v304_v9 = vmul.f32 %v302_v5, %v61_v26 }
  0x7e   :  { %v42_v30 = vmul.f32 %v39_v27, %v28_v25 }
  0x7f   :  { %v277_v32 = vpack.c.bf16 %v274_v23, %v273_v28  ;;  %v246_v33 = vpack.c.bf16 %v243_v24, %v242_v29  ;;  %v147_v59 = vpack.c.bf16 %v144_v56, %v143_v55  ;;  %v308_v13 = vpack.c.bf16 %v305_v10, %v304_v9 }
  0x80   :  { %v56_v34 = vadd.f32 %v53_v31, %v42_v30 }
  0x81   :  { %281 = vrot.lane.b32.xlu0 %v277_v32, %s526_s29  ;;  %250 = vrot.lane.b32.xlu2 %v246_v33, %s524_s21 }
  0x82   :  { %vm58_vm2 = vcmp.ge.f32.partialorder %v56_v34, 0.0  ;;  %v60_v36 = vmul.f32 0.2, %v56_v34 }
  0x84   :  { %v62_v38 = vsel %vm58_vm2, %v56_v34, %v60_v36  ;;  %v172_v47 = vpop.permute.xlu1 %171 }
  0x85   :  { %v209_v40 = vpop.permute.xlu0 %208  ;;  %v275_v41 = vmul.f32 %v271_v14, %v62_v38  ;;  %v244_v42 = vmul.f32 %v240_v21, %v62_v38  ;;  %v495_v49 = vpack.c.bf16 %v62_v38, %v61_v26  ;;  %v174_v53 = vmul.f32 0.0, %v172_v47 }
  0x86   :  { %v213_v43 = vmul.f32 %v209_v40, %v62_v38  ;;  %v214_v44 = vmul.f32 %v266_v35, %v209_v40  ;;  %v211_v50 = vmul.f32 %v209_v40, %v61_v26  ;;  %v212_v51 = vmul.f32 %v617_v19, %v209_v40  ;;  %v343_v19 = vld [vmem:[%s672_s4] sm:$0xff] }
  0x87   :  { %v278_v45 = vpack.c.bf16 %v276_v39, %v275_v41  ;;  %v247_v46 = vpack.c.bf16 %v245_v37, %v244_v42  ;;  %497 = vst [vmem:[#allocation3 + $0x20] sm:$0xff] %v495_v49   ;;  %v175_v54 = vmul.f32 %v172_v47, %v61_v26  ;;  %v177_v61 = vmul.f32 %v172_v47, %v62_v38 }
  0x88   :  { %v216_v48 = vpack.c.bf16 %v214_v44, %v213_v43  ;;  %v215_v57 = vpack.c.bf16 %v212_v51, %v211_v50  ;;  %v146_v62 = vmul.f32 %v141_v52, %v62_v38  ;;  %v306_v15 = vmul.f32 %v302_v5, %v62_v38 }
  0x89   :  { %283 = vrot.lane.b32.xlu1 %v278_v45, %s526_s29  ;;  %252 = vrot.lane.b32.xlu0 %v247_v46, %s524_s21  ;;  %v178_v58 = vpack.c.bf16 %v175_v54, %v174_v53  ;;  %v179_v1 = vpack.c.bf16 %v177_v61, %v174_v53 }
  0x8a   :  { %221 = vrot.lane.b32.xlu2 %v216_v48, %s522_s19  ;;  %v148_v2 = vpack.c.bf16 %v146_v62, %v143_v55  ;;  %v309_v18 = vpack.c.bf16 %v307_v16, %v306_v15 }
  0x8c   :  { %v79_v3 = vpop.permute.xlu1 %78 }
  0x8d   :  { %v110_v60 = vpop.permute.xlu0 %109  ;;  %v81_v7 = vmul.f32 0.0, %v79_v3  ;;  %v82_v8 = vmul.f32 %v79_v3, %v61_v26  ;;  %v84_v14 = vmul.f32 %v79_v3, %v62_v38 }
  0x8e   :  { %v112_v63 = vmul.f32 0.0, %v110_v60  ;;  %v115_v0 = vmul.f32 %v110_v60, %v62_v38  ;;  %v113_v6 = vmul.f32 %v110_v60, %v61_v26 }
  0x8f   :  { %v85_v12 = vpack.c.bf16 %v82_v8, %v81_v7  ;;  %v86_v17 = vpack.c.bf16 %v84_v14, %v81_v7 }
  0x90   :  { %v117_v4 = vpack.c.bf16 %v115_v0, %v112_v63  ;;  %v116_v11 = vpack.c.bf16 %v113_v6, %v112_v63 }
  0x91   :  { %219 = vrot.lane.b32.xlu1 %v215_v57, %s522_s19  ;;  %182 = vrot.lane.b32.xlu0 %v178_v58, %s523_s20 }
  0x92   :  { %151 = vrot.lane.b32.xlu2 %v147_v59, %s521_s14  ;;  %v487_v59 = vld [vmem:[#allocation3 + $0x20] sm:$0xff] }
  0x99   :  { %184 = vrot.lane.b32.xlu1 %v179_v1, %s523_s20  ;;  %153 = vrot.lane.b32.xlu0 %v148_v2, %s521_s14 }
  0x9a   :  { %122 = vrot.lane.b32.xlu2 %v117_v4, %s520_s30 }
  0xa1   :  { %120 = vrot.lane.b32.xlu1 %v116_v11, %s520_s30  ;;  %89 = vrot.lane.b32.xlu0 %v85_v12, %s527_s8  ;;  %v63_v11 = vld [vmem:[%s673_s3] sm:$0xff] }
  0xa2   :  { %312 = vrot.lane.b32.xlu2 %v308_v13, %s525_s28  ;;  %v350_v12 = vunpack.c.l.b16 %v63_v11  ;;  %v351_v13 = vunpack.c.h.b16 %v63_v11 }
  0xa4   :  { %v352_v16 = vpack.c.b16 %v350_v12, %v350_v12 }
  0xa9   :  { %91 = vrot.lane.b32.xlu1 %v86_v17, %s527_s8  ;;  %314 = vrot.lane.b32.xlu0 %v309_v18, %s525_s28  ;;  %v353_v17 = vpack.c.b16 %v351_v13, %v351_v13 }
  0xb1   :  { %346 = vperm.xlu1 %509, %v343_v19  }
  0xdb   :  { %v251_v20 = vpop.permute.xlu2 %250 }
  0xdc   :  { %v254_v21 = vrot.slane %v251_v20, 4 }
  0xde   :  { %v257_v22 = vsel %vm256_vm3, %v251_v20, %v254_v21 }
  0xdf   :  { %261 = vst [vmem:[#allocation3 + $0x30] sm:$0xf] %v257_v22  ;;  %v439_v22 = vld [vmem:[%s674_s6] sm:$0xff] }
  0xe4   :  { %v222_v23 = vpop.permute.xlu2 %221 }
  0xe5   :  { %v224_v24 = vrot.slane %v222_v23, 4 }
  0xe7   :  { %v227_v25 = vsel %vm225_vm4, %v222_v23, %v224_v24 }
  0xe8   :  { %231 = vst [vmem:[#allocation3 + $0x2c] sm:$0xf] %v227_v25 }
  0xec   :  { %v152_v26 = vpop.permute.xlu2 %151 }
  0xed   :  { %v155_v27 = vrot.slane %v152_v26, 4 }
  0xef   :  { %v158_v28 = vsel %vm157_vm5, %v152_v26, %v155_v27 }
  0xf0   :  { %162 = vst [vmem:[#allocation3 + $0x10] sm:$0xf] %v158_v28 }
  0xf3   :  { %v282_v29 = vpop.permute.xlu0 %281 }
  0xf4   :  { %v285_v30 = vrot.slane %v282_v29, 4  ;;  %v123_v31 = vpop.permute.xlu2 %122 }
  0xf5   :  { %v125_v33 = vrot.slane %v123_v31, 4 }
  0xf6   :  { %v288_v32 = vsel %vm287_vm6, %v282_v29, %v285_v30 }
  0xf7   :  { %292 = vst [vmem:[#allocation3 + $0x38] sm:$0xf] %v288_v32  ;;  %v128_v34 = vsel %vm126_vm7, %v123_v31, %v125_v33 }
  0xf8   :  { %132 = vst [vmem:[#allocation3 + $0xc] sm:$0xf] %v128_v34 }
  0xfb   :  { %v284_v35 = vpop.permute.xlu1 %283  ;;  %v253_v37 = vpop.permute.xlu0 %252 }
  0xfc   :  { %v286_v36 = vrot.slane %v284_v35, 4  ;;  %v255_v38 = vrot.slane %v253_v37, 4  ;;  %v313_v39 = vpop.permute.xlu2 %312 }
  0xfd   :  { %v316_v41 = vrot.slane %v313_v39, 4 }
  0xfe   :  { %v289_v40 = vsel %vm287_vm6, %v284_v35, %v286_v36  ;;  %v258_v42 = vsel %vm256_vm3, %v253_v37, %v255_v38 }
  0xff   :  { %293 = vst [vmem:[#allocation3 + $0x3c] sm:$0xf] %v289_v40  ;;  %v319_v43 = vsel %vm318_vm8, %v313_v39, %v316_v41 }
 0x100   :  { %262 = vst [vmem:[#allocation3 + $0x34] sm:$0xf] %v258_v42 }
 0x101   :  { %323 = vst [vmem:[#allocation3 + $0x40] sm:$0xf] %v319_v43 }
 0x103   :  { %v220_v44 = vpop.permute.xlu1 %219  ;;  %v183_v46 = vpop.permute.xlu0 %182 }
 0x104   :  { %v223_v45 = vrot.slane %v220_v44, 4  ;;  %v186_v47 = vrot.slane %v183_v46, 4 }
 0x106   :  { %v226_v48 = vsel %vm225_vm4, %v220_v44, %v223_v45  ;;  %v490_v49 = vld [vmem:[#allocation3 + $0x38] sm:$0xff]  ;;  %v189_v50 = vsel %vm188_vm9, %v183_v46, %v186_v47 }
 0x107   :  { %230 = vst [vmem:[#allocation3 + $0x28] sm:$0xf] %v226_v48  ;;  %413 = vmatpush.bf16.msra.mxu0 %v490_v49  ;;  %v489_v51 = vld [vmem:[#allocation3 + $0x30] sm:$0xff] }
 0x108   :  { %193 = vst [vmem:[#allocation3 + $0x18] sm:$0xf] %v189_v50 }
 0x10b   :  { %v185_v52 = vpop.permute.xlu1 %184  ;;  %v154_v54 = vpop.permute.xlu0 %153  ;;  %414 = vmatpush.bf16.msra.mxu0 %v489_v51 }
 0x10c   :  { %v187_v53 = vrot.slane %v185_v52, 4  ;;  %v156_v55 = vrot.slane %v154_v54, 4 }
 0x10e   :  { %v190_v56 = vsel %vm188_vm9, %v185_v52, %v187_v53  ;;  %v488_v57 = vld [vmem:[#allocation3 + $0x28] sm:$0xff]  ;;  %v159_v58 = vsel %vm157_vm5, %v154_v54, %v156_v55 }
 0x10f   :  { %194 = vst [vmem:[#allocation3 + $0x1c] sm:$0xf] %v190_v56  ;;  %415 = vmatpush.bf16.msra.mxu0 %v488_v57 }
 0x110   :  { %163 = vst [vmem:[#allocation3 + $0x14] sm:$0xf] %v159_v58 }
 0x113   :  { %v121_v60 = vpop.permute.xlu1 %120  ;;  %v90_v62 = vpop.permute.xlu0 %89  ;;  %416 = vmatpush.bf16.msra.mxu0 %v487_v59 }
 0x114   :  { %v124_v61 = vrot.slane %v121_v60, 4  ;;  %v93_v63 = vrot.slane %v90_v62, 4 }
 0x116   :  { %v127_v0 = vsel %vm126_vm7, %v121_v60, %v124_v61  ;;  %v486_v1 = vld [vmem:[#allocation3 + $0x18] sm:$0xff]  ;;  %v96_v2 = vsel %vm66_vm0, %v90_v62, %v93_v63 }
 0x117   :  { %131 = vst [vmem:[#allocation3 + $0x8] sm:$0xf] %v127_v0  ;;  %417 = vmatpush.bf16.msra.mxu0 %v486_v1  ;;  %v485_v3 = vld [vmem:[#allocation3 + $0x10] sm:$0xff] }
 0x118   :  { %100 = vst [vmem:[#allocation3] sm:$0xf] %v96_v2 }
 0x11b   :  { %v92_v4 = vpop.permute.xlu1 %91  ;;  %v315_v6 = vpop.permute.xlu0 %314  ;;  %418 = vmatpush.bf16.msra.mxu0 %v485_v3 }
 0x11c   :  { %v94_v5 = vrot.slane %v92_v4, 4  ;;  %v317_v7 = vrot.slane %v315_v6, 4 }
 0x11e   :  { %v97_v8 = vsel %vm66_vm0, %v92_v4, %v94_v5  ;;  %v484_v9 = vld [vmem:[#allocation3 + $0x8] sm:$0xff]  ;;  %v320_v10 = vsel %vm318_vm8, %v315_v6, %v317_v7 }
 0x11f   :  { %101 = vst [vmem:[#allocation3 + $0x4] sm:$0xf] %v97_v8  ;;  %419 = vmatpush.bf16.msra.mxu0 %v484_v9 }
 0x120   :  { %324 = vst [vmem:[#allocation3 + $0x44] sm:$0xf] %v320_v10 }
 0x123   :  { %v347_v18 = vpop.permute.xlu1 %346 }
 0x126   :  { %v483_v14 = vld [vmem:[#allocation3] sm:$0xff] }
 0x127   :  { %v491_v15 = vld [vmem:[#allocation3 + $0x40] sm:$0xff]  ;;  %420 = vmatpush.bf16.msra.mxu0 %v483_v14 }
 0x128   :  { %433 = vmatpush.bf16.msra.mxu1 %v491_v15 }
 0x12a   :  { %421 = vmatmul.bf16.vlgmr.msra.gmra.mxu0 %v352_v16 }
 0x12b   :  { %482 = vmatmul.msk.bf16.vlgmr.msra.gmra.mxu1 %vm409_vm10, %v353_v17 }
 0x1a7   :  { %v422_v19 = vpop.f32.mrf.mxu0 }
 0x1a8   :  { %v423_v20 = vadd.f32 %v422_v19, %v347_v18  ;;  %v435_v21 = vpop.f32.mrf.mxu1 }
 0x1aa   :  { %v436_v23 = vadd.f32 %v435_v21, %v423_v20 }
 0x1ac   :  { %v440_v24 = vadd.f32 %v439_v22, %v436_v23 }
 0x1ae   :  { %441 = vst [vmem:[%s675_s7] sm:$0xff] %v440_v24 }
 0x1af   :  { %v424_v25 = vpop.f32.mrf.mxu0 }
 0x1b0   :  { %v437_v26 = vpop.f32.mrf.mxu1 }

</bundles_post_ra>
